<compile_context>
chip_gen: v7x
topology: tpu7x:2x2x1
jax: 0.10.0
libtpu: 0.0.40
codegen_flags: <defaults>
</compile_context>

<pallas_src>
import math
from functools import partial

import jax
import jax.numpy as jnp
import numpy as np
from jax import lax
from jax.experimental import pallas as pl
from jax.experimental.pallas import tpu as pltpu

_VMEM_LIMIT = 32 * 1024 * 1024   # explicit scoped-VMEM limit (v5e default is only 16 MiB)
_LANE = 128
_NEG_INF = -1e30                 # additive mask value for cross-batch attention entries


def _round_up(n, m):
    return ((n + m - 1) // m) * m


# ----------------------------- fused encoder kernel -------------------------------- #

def _make_encoder_kernel(B, T, D, num_heads, eps=1e-5):
    """One grid step == one transformer Block (stride=1, causal_shift=0) on the resident
    (B*T, D) activation; step 0 additionally runs expand-conv + PE, last step runs the
    shrink-conv and writes the only HBM output."""
    M = B * T
    H = num_heads
    dh = D // num_heads
    bf = jnp.bfloat16

    def layer_norm(v, g, b):
        # single-pass stats: one lane reduce for sum(x) and one for sum(x*x)
        inv_d = 1.0 / D
        mu = jnp.sum(v, axis=-1, keepdims=True) * inv_d
        ex2 = jnp.sum(v * v, axis=-1, keepdims=True) * inv_d
        var = ex2 - mu * mu
        return (v - mu) * lax.rsqrt(var + eps) * g + b

    def kernel(x_in_ref, wexpT_ref, bexp_ref, pe_ref, mask_ref,
               wqkvT_ref, bqkv_ref, woT_ref, bo_ref,
               ln1g_ref, ln1b_ref, w1T_ref, b1_ref, w2T_ref, b2_ref,
               ln2g_ref, ln2b_ref, wshrT_ref, bshr_ref,
               y_ref, x_vmem):
        layer = pl.program_id(0)

        # ---- expandingLayer (1x1 conv, K padded to 128) + positional encoding ----
        @pl.when(layer == 0)
        def _():
            x0 = jnp.dot(x_in_ref[...].astype(bf), wexpT_ref[...],
                         preferred_element_type=jnp.float32)
            x_vmem[...] = x0 + bexp_ref[...] + pe_ref[...]

        x = x_vmem[...]                                                  # (M, D) f32

        # ---- fused QKV projection on batch-folded rows (one bf16 MXU pass, M=B*T) ----
        # 1/sqrt(dh) is folded into the Q columns/bias at trace time.
        qkv = jnp.dot(x.astype(bf), wqkvT_ref[0],
                      preferred_element_type=jnp.float32) + bqkv_ref[0]   # (M, 3D) f32

        # ---- head split: one 2-D transpose, then tile-aligned sublane slabs per head ----
        # (columns are packed [Q_all | K_all | V_all]; after the transpose each head is a
        #  dh-row sublane-aligned slab -> no masked lane extracts.  With D a multiple of
        #  128 this whole block becomes a single reshape/einshape.)
        qkvT = qkv.T                                                      # (3D, M)

        def split_heads(which):
            base = which * D
            return jnp.stack(
                [qkvT[base + h * dh:base + (h + 1) * dh, :].T for h in range(H)],
                axis=0).astype(bf)                                        # (H, M, dh)

        qh, kh, vh = split_heads(0), split_heads(1), split_heads(2)

        # ---- batched attention over heads; block-diag mask keeps batches separate ----
        s = jnp.einsum("hqd,hkd->hqk", qh, kh,
                       preferred_element_type=jnp.float32)                # (H, M, M) f32
        s = s + mask_ref[...]
        s = s - jnp.max(s, axis=-1, keepdims=True)
        p = jnp.exp(s)
        p = p * pl.reciprocal(jnp.sum(p, axis=-1, keepdims=True), approx=True)

        o = jnp.einsum("hqk,hkd->hqd", p.astype(bf), vh,
                       preferred_element_type=jnp.float32)                # (H, M, dh) f32

        # ---- out-projection: ONE matmul with contraction K = H*dh = D ----
        o2d = jnp.concatenate([o[h] for h in range(H)], axis=-1).astype(bf)   # (M, D)
        attn = jnp.dot(o2d, woT_ref[0],
                       preferred_element_type=jnp.float32) + bo_ref[0]    # (M, D)

        # ---- residual + LayerNorm1 (f32) ----
        src2 = layer_norm(x + attn, ln1g_ref[0], ln1b_ref[0])

        # ---- 1x1-conv FFN (stride=1, causal_shift=0 -> no row gather); C padded to 128 ----
        hid = jnp.maximum(
            jnp.dot(src2.astype(bf), w1T_ref[0],
                    preferred_element_type=jnp.float32) + b1_ref[0], 0.0)
        ffn = jnp.dot(hid.astype(bf), w2T_ref[0],
                      preferred_element_type=jnp.float32) + b2_ref[0]

        # ---- residual + LayerNorm2, keep activation resident for the next grid step ----
        out = layer_norm(src2 + ffn, ln2g_ref[0], ln2b_ref[0])
        x_vmem[...] = out

        # ---- stridedShrinkLayer (1x1 conv), lane-dense (128-wide) output store ----
        @pl.when(layer == pl.num_programs(0) - 1)
        def _():
            y_ref[...] = (jnp.dot(out.astype(bf), wshrT_ref[...],
                                  preferred_element_type=jnp.float32)
                          + bshr_ref[...]).astype(y_ref.dtype)

    return kernel


# ----------------------------- BlockSpec helpers --------------------------- #

def _inv_spec(shape):
    # Grid-invariant block: same block every step, DMA'd once.
    # TODO(synk): at production sizes add pipeline_mode=pl.Buffered(1) (or make these
    # weights VMEM-resident) to drop the second pipeline buffer.
    rank = len(shape)
    return pl.BlockSpec(tuple(shape), lambda l, _r=rank: (0,) * _r)


def _layer_spec(shape):
    # Per-Block weights stacked on a leading N1 axis, streamed one layer per grid step.
    rank = len(shape)
    return pl.BlockSpec((1,) + tuple(shape), lambda l, _r=rank: (l,) + (0,) * _r)


# ------------------------------ JAX glue ------------------------------------- #

def positional_encoding(T, D, dtype=jnp.float32):
    pos = jnp.arange(T, dtype=jnp.float32)[:, None]
    i = jnp.arange(0, D, 2, dtype=jnp.float32)[None, :]
    ang = pos * jnp.exp(i * (-math.log(10000.0) / D))
    pe = jnp.zeros((T, D), jnp.float32)
    pe = pe.at[:, 0::2].set(jnp.sin(ang))
    pe = pe.at[:, 1::2].set(jnp.cos(ang))
    return pe.astype(dtype)


def _prep_operands(x, params, num_heads):
    """Trace-time repack of PyTorch-layout params into fused-kernel operands."""
    bf = jnp.bfloat16
    f32 = jnp.float32
    B, T, Fin = x.shape
    D = params["expand"]["w"].shape[0]
    Fout = params["shrink"]["w"].shape[0]
    C = params["blocks"][0]["w1"].shape[0]
    dh = D // num_heads
    scale = 1.0 / math.sqrt(dh)
    M = B * T
    FinP, CP, FoutP = _round_up(Fin, _LANE), _round_up(C, _LANE), _round_up(Fout, _LANE)

    def pad_cols(a, n):
        return jnp.zeros(a.shape[:-1] + (n,), a.dtype).at[..., :a.shape[-1]].set(a)

    def pad_rows(a, n):
        return jnp.zeros((n,) + a.shape[1:], a.dtype).at[:a.shape[0]].set(a)

    # input rows zero-padded to a full lane width (exact: matching weight rows are zero)
    x2d = jnp.zeros((M, FinP), f32).at[:, :Fin].set(x.reshape(M, Fin))
    wexpT = pad_rows(params["expand"]["w"].T, FinP).astype(bf)              # (FinP, D)
    bexp = params["expand"]["b"][None, :].astype(f32)                       # (1, D)

    pe = jnp.tile(positional_encoding(T, D), (B, 1)).astype(f32)            # (M, D)

    # block-diagonal additive mask (keeps attention within each batch element)
    bid = jnp.arange(M, dtype=jnp.int32) // T
    mask = jnp.where(bid[:, None] == bid[None, :], 0.0, _NEG_INF).astype(f32)

    blocks = params["blocks"]

    def stack(fn):
        return jnp.stack([fn(p) for p in blocks], axis=0)

    ops = dict(
        x2d=x2d, wexpT=wexpT, bexp=bexp, pe=pe, mask=mask,
        # fused QKV columns packed [Q_all | K_all | V_all]; 1/sqrt(dh) folded into Q
        wqkvT=stack(lambda p: jnp.concatenate(
            [p["wq"].T * scale, p["wk"].T, p["wv"].T], axis=1)).astype(bf),   # (N1, D, 3D)
        bqkv=stack(lambda p: jnp.concatenate(
            [p["bq"] * scale, p["bk"], p["bv"]])[None, :]).astype(f32),       # (N1, 1, 3D)
        woT=stack(lambda p: p["wo"].T).astype(bf),                            # (N1, D, D)
        bo=stack(lambda p: p["bo"][None, :]).astype(f32),
        ln1g=stack(lambda p: p["ln1g"][None, :]).astype(f32),
        ln1b=stack(lambda p: p["ln1b"][None, :]).astype(f32),
        w1T=stack(lambda p: pad_cols(p["w1"].T, CP)).astype(bf),              # (N1, D, CP)
        b1=stack(lambda p: pad_cols(p["b1"][None, :], CP)).astype(f32),       # (N1, 1, CP)
        w2T=stack(lambda p: pad_rows(p["w2"].T, CP)).astype(bf),              # (N1, CP, D)
        b2=stack(lambda p: p["b2"][None, :]).astype(f32),
        ln2g=stack(lambda p: p["ln2g"][None, :]).astype(f32),
        ln2b=stack(lambda p: p["ln2b"][None, :]).astype(f32),
        wshrT=pad_cols(params["shrink"]["w"].T, FoutP).astype(bf),            # (D, FoutP)
        bshr=pad_cols(params["shrink"]["b"][None, :], FoutP).astype(f32),     # (1, FoutP)
    )
    return ops


def vanilla_transformer_encoder_forward(x, params, num_heads):
    assert x.ndim == 3 and x.shape[-1] == params["expand"]["w"].shape[1]
    B, T, Fin = x.shape
    D = params["expand"]["w"].shape[0]
    Fout = params["shrink"]["w"].shape[0]
    C = params["blocks"][0]["w1"].shape[0]
    N1 = len(params["blocks"])
    assert D % num_heads == 0
    M = B * T
    FinP, CP, FoutP = _round_up(Fin, _LANE), _round_up(C, _LANE), _round_up(Fout, _LANE)

    ops = _prep_operands(x, params, num_heads)
    kernel = _make_encoder_kernel(B, T, D, num_heads)

    in_specs = [
        _inv_spec((M, FinP)),          # padded input rows
        _inv_spec((FinP, D)),          # expand weight
        _inv_spec((1, D)),             # expand bias
        _inv_spec((M, D)),             # positional encoding (tiled over batch)
        _inv_spec((M, M)),             # block-diagonal attention mask
        _layer_spec((D, 3 * D)),       # fused QKV weight
        _layer_spec((1, 3 * D)),       # fused QKV bias
        _layer_spec((D, D)),           # out-proj weight
        _layer_spec((1, D)),           # out-proj bias
        _layer_spec((1, D)),           # ln1 gamma
        _layer_spec((1, D)),           # ln1 beta
        _layer_spec((D, CP)),          # conv1 weight
        _layer_spec((1, CP)),          # conv1 bias
        _layer_spec((CP, D)),          # conv2 weight
        _layer_spec((1, D)),           # conv2 bias
        _layer_spec((1, D)),           # ln2 gamma
        _layer_spec((1, D)),           # ln2 beta
        _inv_spec((D, FoutP)),         # shrink weight
        _inv_spec((1, FoutP)),         # shrink bias
    ]

    y = pl.pallas_call(
        kernel,
        out_shape=jax.ShapeDtypeStruct((M, FoutP), jnp.float32),
        grid_spec=pltpu.PrefetchScalarGridSpec(
            num_scalar_prefetch=0,
            grid=(N1,),                                  # one grid step per Block
            in_specs=in_specs,
            out_specs=_inv_spec((M, FoutP)),             # written at the last step only
            scratch_shapes=[pltpu.VMEM((M, D), jnp.float32)],   # resident activation
        ),
        compiler_params=pltpu.CompilerParams(
            # layer axis is a sequential carry through the VMEM scratch
            dimension_semantics=("arbitrary",),
            vmem_limit_bytes=_VMEM_LIMIT),
    )(ops["x2d"], ops["wexpT"], ops["bexp"], ops["pe"], ops["mask"],
      ops["wqkvT"], ops["bqkv"], ops["woT"], ops["bo"],
      ops["ln1g"], ops["ln1b"], ops["w1T"], ops["b1"], ops["w2T"], ops["b2"],
      ops["ln2g"], ops["ln2b"], ops["wshrT"], ops["bshr"])

    return y[:, :Fout].reshape(B, T, Fout)


def init_params(key, Fin, Fout, D, C, N1):
    sc = 0.05

    def n(k, shape):
        return sc * jax.random.normal(k, shape, jnp.float32)

    def block(k):
        ks = jax.random.split(k, 12)
        return dict(
            wq=n(ks[0], (D, D)), wk=n(ks[1], (D, D)), wv=n(ks[2], (D, D)),
            bq=n(ks[3], (D,)), bk=n(ks[4], (D,)), bv=n(ks[5], (D,)),
            wo=n(ks[6], (D, D)), bo=n(ks[7], (D,)),
            ln1g=1.0 + n(ks[8], (D,)), ln1b=n(ks[9], (D,)),
            w1=n(ks[10], (C, D)), b1=jnp.zeros((C,), jnp.float32),
            w2=n(ks[11], (D, C)), b2=jnp.zeros((D,), jnp.float32),
            ln2g=jnp.ones((D,), jnp.float32), ln2b=jnp.zeros((D,), jnp.float32),
        )

    keys = jax.random.split(key, 2 + N1)
    ke = jax.random.split(keys[0], 2)
    ks = jax.random.split(keys[1], 2)
    return dict(
        expand=dict(w=n(ke[0], (D, Fin)), b=n(ke[1], (D,))),
        shrink=dict(w=n(ks[0], (Fout, D)), b=n(ks[1], (Fout,))),
        blocks=[block(k) for k in keys[2:]],
    )


# -------------------------- pure-JAX reference ------------------------------- #
# Mirrors the kernel's bf16-operand / f32-accumulation choices so tolerances stay tight.

def _layer_norm_ref(v, g, b, eps=1e-5):
    mu = v.mean(-1, keepdims=True)
    var = ((v - mu) ** 2).mean(-1, keepdims=True)
    return (v - mu) / jnp.sqrt(var + eps) * g + b


def _ref_forward(x, params, num_heads):
    bf = jnp.bfloat16
    B, T, _ = x.shape
    D = params["expand"]["w"].shape[0]
    dh = D // num_heads
    scale = 1.0 / math.sqrt(dh)

    def mm(a, w):
        return jnp.einsum("...ik,kj->...ij", a.astype(bf), w.astype(bf),
                          preferred_element_type=jnp.float32)

    x = mm(x, params["expand"]["w"].T) + params["expand"]["b"]
    x = x + positional_encoding(T, D)[None]

    for p in params["blocks"]:
        q = mm(x, p["wq"].T * scale) + p["bq"] * scale
        k = mm(x, p["wk"].T) + p["bk"]
        v = mm(x, p["wv"].T) + p["bv"]
        qh = q.reshape(B, T, num_heads, dh).transpose(0, 2, 1, 3).astype(bf)
        kh = k.reshape(B, T, num_heads, dh).transpose(0, 2, 1, 3).astype(bf)
        vh = v.reshape(B, T, num_heads, dh).transpose(0, 2, 1, 3).astype(bf)
        s = jnp.einsum("bhqd,bhkd->bhqk", qh, kh, preferred_element_type=jnp.float32)
        a = jax.nn.softmax(s, axis=-1)
        o = jnp.einsum("bhqk,bhkd->bhqd", a.astype(bf), vh,
                       preferred_element_type=jnp.float32)
        o = o.transpose(0, 2, 1, 3).reshape(B, T, D)
        attn = mm(o, p["wo"].T) + p["bo"]
        src2 = _layer_norm_ref(x + attn, p["ln1g"], p["ln1b"])
        hid = jax.nn.relu(mm(src2, p["w1"].T) + p["b1"])
        branch = mm(hid, p["w2"].T) + p["b2"]
        x = _layer_norm_ref(src2 + branch, p["ln2g"], p["ln2b"])

    return mm(x, params["shrink"]["w"].T) + params["shrink"]["b"]


# --------------------------------- main --------------------------------------- #

if __name__ == "__main__":
    B, T, Fin, Fout, D, H, C, N1 = 2, 16, 16, 24, 32, 4, 64, 3

    key = jax.random.PRNGKey(0)
    kx, kp = jax.random.split(key)
    x = jax.random.normal(kx, (B, T, Fin), jnp.float32)
    params = init_params(kp, Fin, Fout, D, C, N1)

    fwd = jax.jit(partial(vanilla_transformer_encoder_forward, num_heads=H))
    out = jax.block_until_ready(fwd(x, params))

    ref = _ref_forward(x, params, H)
    assert out.shape == (B, T, Fout), out.shape
    np.testing.assert_allclose(np.asarray(out), np.asarray(ref), atol=2e-2, rtol=2e-2)

    print("KERNEL_OK")
</pallas_src>

<mosaic_0001>
module attributes {stable_mosaic.version = 11 : i64} {
  func.func @kernel(%arg0: i32, %arg1: memref<32x128xf32, #tpu.memory_space<vmem>>, %arg2: memref<128x32xbf16, #tpu.memory_space<vmem>>, %arg3: memref<1x32xf32, #tpu.memory_space<vmem>>, %arg4: memref<32x32xf32, #tpu.memory_space<vmem>>, %arg5: memref<32x32xf32, #tpu.memory_space<vmem>>, %arg6: memref<1x32x96xbf16, #tpu.memory_space<vmem>>, %arg7: memref<1x1x96xf32, #tpu.memory_space<vmem>>, %arg8: memref<1x32x32xbf16, #tpu.memory_space<vmem>>, %arg9: memref<1x1x32xf32, #tpu.memory_space<vmem>>, %arg10: memref<1x1x32xf32, #tpu.memory_space<vmem>>, %arg11: memref<1x1x32xf32, #tpu.memory_space<vmem>>, %arg12: memref<1x32x128xbf16, #tpu.memory_space<vmem>>, %arg13: memref<1x1x128xf32, #tpu.memory_space<vmem>>, %arg14: memref<1x128x32xbf16, #tpu.memory_space<vmem>>, %arg15: memref<1x1x32xf32, #tpu.memory_space<vmem>>, %arg16: memref<1x1x32xf32, #tpu.memory_space<vmem>>, %arg17: memref<1x1x32xf32, #tpu.memory_space<vmem>>, %arg18: memref<32x128xbf16, #tpu.memory_space<vmem>>, %arg19: memref<1x128xf32, #tpu.memory_space<vmem>>, %arg20: memref<32x128xf32, #tpu.memory_space<vmem>>, %arg21: memref<32x32xf32, #tpu.memory_space<vmem>>) attributes {dimension_semantics = [#tpu.dimension_semantics<arbitrary>], iteration_bounds = array<i64: 3>, scalar_prefetch = 0 : i64, scratch_operands = 1 : i64, tpu.core_type = #tpu.core_type<tc>, window_params = [{pipeline_mode = #tpu.pipeline_mode<synchronous>, transform_indices = @transform_0, window_bounds = array<i64: 32, 128>}, {pipeline_mode = #tpu.pipeline_mode<synchronous>, transform_indices = @transform_1, window_bounds = array<i64: 128, 32>}, {pipeline_mode = #tpu.pipeline_mode<synchronous>, transform_indices = @transform_2, window_bounds = array<i64: 1, 32>}, {pipeline_mode = #tpu.pipeline_mode<synchronous>, transform_indices = @transform_3, window_bounds = array<i64: 32, 32>}, {pipeline_mode = #tpu.pipeline_mode<synchronous>, transform_indices = @transform_4, window_bounds = array<i64: 32, 32>}, {transform_indices = @transform_5, window_bounds = array<i64: 1, 32, 96>}, {transform_indices = @transform_6, window_bounds = array<i64: 1, 1, 96>}, {transform_indices = @transform_7, window_bounds = array<i64: 1, 32, 32>}, {transform_indices = @transform_8, window_bounds = array<i64: 1, 1, 32>}, {transform_indices = @transform_9, window_bounds = array<i64: 1, 1, 32>}, {transform_indices = @transform_10, window_bounds = array<i64: 1, 1, 32>}, {transform_indices = @transform_11, window_bounds = array<i64: 1, 32, 128>}, {transform_indices = @transform_12, window_bounds = array<i64: 1, 1, 128>}, {transform_indices = @transform_13, window_bounds = array<i64: 1, 128, 32>}, {transform_indices = @transform_14, window_bounds = array<i64: 1, 1, 32>}, {transform_indices = @transform_15, window_bounds = array<i64: 1, 1, 32>}, {transform_indices = @transform_16, window_bounds = array<i64: 1, 1, 32>}, {pipeline_mode = #tpu.pipeline_mode<synchronous>, transform_indices = @transform_17, window_bounds = array<i64: 32, 128>}, {pipeline_mode = #tpu.pipeline_mode<synchronous>, transform_indices = @transform_18, window_bounds = array<i64: 1, 128>}, {pipeline_mode = #tpu.pipeline_mode<synchronous>, transform_indices = @transform_19, window_bounds = array<i64: 32, 128>}]} {
    %c0_i32 = arith.constant 0 : i32
    %0 = arith.cmpi eq, %arg0, %c0_i32 : i32
    %1 = arith.extui %0 : i1 to i32
    %c0_i32_0 = arith.constant 0 : i32
    %2 = arith.cmpi ne, %1, %c0_i32_0 : i32
    scf.if %2 {
      %c0_61 = arith.constant 0 : index
      %c0_62 = arith.constant 0 : index
      %165 = vector.load %arg1[%c0_61, %c0_62] : memref<32x128xf32, #tpu.memory_space<vmem>>, vector<32x128xf32>
      %166 = arith.truncf %165 : vector<32x128xf32> to vector<32x128xbf16>
      %c0_63 = arith.constant 0 : index
      %c0_64 = arith.constant 0 : index
      %167 = vector.load %arg2[%c0_63, %c0_64] : memref<128x32xbf16, #tpu.memory_space<vmem>>, vector<128x32xbf16>
      %cst_65 = arith.constant dense<0.000000e+00> : vector<32x32xf32>
      %168 = tpu.matmul %166, %167, %cst_65 {dimension_numbers = #tpu.dot_dimension_numbers<[1], [0], [0], [1], [0, 0, 1, 1], [], []>} : vector<32x128xbf16>, vector<128x32xbf16>, vector<32x32xf32> -> vector<32x32xf32>
      %c0_66 = arith.constant 0 : index
      %c0_67 = arith.constant 0 : index
      %169 = vector.load %arg3[%c0_66, %c0_67] : memref<1x32xf32, #tpu.memory_space<vmem>>, vector<1x32xf32>
      %170 = vector.broadcast %169 : vector<1x32xf32> to vector<32x32xf32>
      %171 = arith.addf %168, %170 : vector<32x32xf32>
      %c0_68 = arith.constant 0 : index
      %c0_69 = arith.constant 0 : index
      %172 = vector.load %arg4[%c0_68, %c0_69] : memref<32x32xf32, #tpu.memory_space<vmem>>, vector<32x32xf32>
      %173 = arith.addf %171, %172 : vector<32x32xf32>
      %c0_70 = arith.constant 0 : index
      %c0_71 = arith.constant 0 : index
      %174 = vector.load %arg21[%c0_70, %c0_71] : memref<32x32xf32, #tpu.memory_space<vmem>>, vector<32x32xf32>
      tpu.vector_store %arg21[%c0_70, %c0_71], %173 {strides = array<i32>} : memref<32x32xf32, #tpu.memory_space<vmem>>, vector<32x32xf32>,
    } else {
    }
    %c0 = arith.constant 0 : index
    %c0_1 = arith.constant 0 : index
    %3 = vector.load %arg21[%c0, %c0_1] : memref<32x32xf32, #tpu.memory_space<vmem>>, vector<32x32xf32>
    %4 = arith.truncf %3 : vector<32x32xf32> to vector<32x32xbf16>
    %c0_2 = arith.constant 0 : index
    %c0_3 = arith.constant 0 : index
    %c0_4 = arith.constant 0 : index
    %5 = vector.load %arg6[%c0_2, %c0_3, %c0_4] : memref<1x32x96xbf16, #tpu.memory_space<vmem>>, vector<1x32x96xbf16>
    %6 = vector.shape_cast %5 : vector<1x32x96xbf16> to vector<32x96xbf16>
    %cst = arith.constant dense<0.000000e+00> : vector<32x96xf32>
    %7 = tpu.matmul %4, %6, %cst {dimension_numbers = #tpu.dot_dimension_numbers<[1], [0], [0], [1], [0, 0, 1, 1], [], []>} : vector<32x32xbf16>, vector<32x96xbf16>, vector<32x96xf32> -> vector<32x96xf32>
    %c0_5 = arith.constant 0 : index
    %c0_6 = arith.constant 0 : index
    %c0_7 = arith.constant 0 : index
    %8 = vector.load %arg7[%c0_5, %c0_6, %c0_7] : memref<1x1x96xf32, #tpu.memory_space<vmem>>, vector<1x1x96xf32>
    %9 = vector.shape_cast %8 : vector<1x1x96xf32> to vector<1x96xf32>
    %10 = vector.broadcast %9 : vector<1x96xf32> to vector<32x96xf32>
    %11 = arith.addf %7, %10 : vector<32x96xf32>
    %12 = tpu.transpose %11, [1, 0] : vector<32x96xf32> -> vector<96x32xf32>
    %13 = vector.extract_strided_slice %12 {offsets = [0, 0], sizes = [8, 32], strides = [1, 1]} : vector<96x32xf32> to vector<8x32xf32>
    %14 = tpu.transpose %13, [1, 0] : vector<8x32xf32> -> vector<32x8xf32>
    %15 = vector.extract_strided_slice %12 {offsets = [8, 0], sizes = [8, 32], strides = [1, 1]} : vector<96x32xf32> to vector<8x32xf32>
    %16 = tpu.transpose %15, [1, 0] : vector<8x32xf32> -> vector<32x8xf32>
    %17 = vector.extract_strided_slice %12 {offsets = [16, 0], sizes = [8, 32], strides = [1, 1]} : vector<96x32xf32> to vector<8x32xf32>
    %18 = tpu.transpose %17, [1, 0] : vector<8x32xf32> -> vector<32x8xf32>
    %19 = vector.extract_strided_slice %12 {offsets = [24, 0], sizes = [8, 32], strides = [1, 1]} : vector<96x32xf32> to vector<8x32xf32>
    %20 = tpu.transpose %19, [1, 0] : vector<8x32xf32> -> vector<32x8xf32>
    %21 = vector.shape_cast %14 : vector<32x8xf32> to vector<1x32x8xf32>
    %22 = vector.shape_cast %16 : vector<32x8xf32> to vector<1x32x8xf32>
    %23 = vector.shape_cast %18 : vector<32x8xf32> to vector<1x32x8xf32>
    %24 = vector.shape_cast %20 : vector<32x8xf32> to vector<1x32x8xf32>
    %25 = tpu.concatenate %21, %22, %23, %24 in 0 : vector<1x32x8xf32>, vector<1x32x8xf32>, vector<1x32x8xf32>, vector<1x32x8xf32> -> vector<4x32x8xf32>
    %26 = arith.truncf %25 : vector<4x32x8xf32> to vector<4x32x8xbf16>
    %27 = vector.extract_strided_slice %12 {offsets = [32, 0], sizes = [8, 32], strides = [1, 1]} : vector<96x32xf32> to vector<8x32xf32>
    %28 = tpu.transpose %27, [1, 0] : vector<8x32xf32> -> vector<32x8xf32>
    %29 = vector.extract_strided_slice %12 {offsets = [40, 0], sizes = [8, 32], strides = [1, 1]} : vector<96x32xf32> to vector<8x32xf32>
    %30 = tpu.transpose %29, [1, 0] : vector<8x32xf32> -> vector<32x8xf32>
    %31 = vector.extract_strided_slice %12 {offsets = [48, 0], sizes = [8, 32], strides = [1, 1]} : vector<96x32xf32> to vector<8x32xf32>
    %32 = tpu.transpose %31, [1, 0] : vector<8x32xf32> -> vector<32x8xf32>
    %33 = vector.extract_strided_slice %12 {offsets = [56, 0], sizes = [8, 32], strides = [1, 1]} : vector<96x32xf32> to vector<8x32xf32>
    %34 = tpu.transpose %33, [1, 0] : vector<8x32xf32> -> vector<32x8xf32>
    %35 = vector.shape_cast %28 : vector<32x8xf32> to vector<1x32x8xf32>
    %36 = vector.shape_cast %30 : vector<32x8xf32> to vector<1x32x8xf32>
    %37 = vector.shape_cast %32 : vector<32x8xf32> to vector<1x32x8xf32>
    %38 = vector.shape_cast %34 : vector<32x8xf32> to vector<1x32x8xf32>
    %39 = tpu.concatenate %35, %36, %37, %38 in 0 : vector<1x32x8xf32>, vector<1x32x8xf32>, vector<1x32x8xf32>, vector<1x32x8xf32> -> vector<4x32x8xf32>
    %40 = arith.truncf %39 : vector<4x32x8xf32> to vector<4x32x8xbf16>
    %41 = vector.extract_strided_slice %12 {offsets = [64, 0], sizes = [8, 32], strides = [1, 1]} : vector<96x32xf32> to vector<8x32xf32>
    %42 = tpu.transpose %41, [1, 0] : vector<8x32xf32> -> vector<32x8xf32>
    %43 = vector.extract_strided_slice %12 {offsets = [72, 0], sizes = [8, 32], strides = [1, 1]} : vector<96x32xf32> to vector<8x32xf32>
    %44 = tpu.transpose %43, [1, 0] : vector<8x32xf32> -> vector<32x8xf32>
    %45 = vector.extract_strided_slice %12 {offsets = [80, 0], sizes = [8, 32], strides = [1, 1]} : vector<96x32xf32> to vector<8x32xf32>
    %46 = tpu.transpose %45, [1, 0] : vector<8x32xf32> -> vector<32x8xf32>
    %47 = vector.extract_strided_slice %12 {offsets = [88, 0], sizes = [8, 32], strides = [1, 1]} : vector<96x32xf32> to vector<8x32xf32>
    %48 = tpu.transpose %47, [1, 0] : vector<8x32xf32> -> vector<32x8xf32>
    %49 = vector.shape_cast %42 : vector<32x8xf32> to vector<1x32x8xf32>
    %50 = vector.shape_cast %44 : vector<32x8xf32> to vector<1x32x8xf32>
    %51 = vector.shape_cast %46 : vector<32x8xf32> to vector<1x32x8xf32>
    %52 = vector.shape_cast %48 : vector<32x8xf32> to vector<1x32x8xf32>
    %53 = tpu.concatenate %49, %50, %51, %52 in 0 : vector<1x32x8xf32>, vector<1x32x8xf32>, vector<1x32x8xf32>, vector<1x32x8xf32> -> vector<4x32x8xf32>
    %54 = arith.truncf %53 : vector<4x32x8xf32> to vector<4x32x8xbf16>
    "tpu.trace_start"() <{level = 10 : i32, message = "hqd,hkd->hqk"}> : () -> ()
    %cst_8 = arith.constant dense<0.000000e+00> : vector<4x32x32xf32>
    %55 = tpu.matmul %26, %40, %cst_8 {dimension_numbers = #tpu.dot_dimension_numbers<[2], [2], [1], [1], [0, 0, 0, 1, 1, 1], [0], [0]>} : vector<4x32x8xbf16>, vector<4x32x8xbf16>, vector<4x32x32xf32> -> vector<4x32x32xf32>
    "tpu.trace_stop"() : () -> ()
    %c0_9 = arith.constant 0 : index
    %c0_10 = arith.constant 0 : index
    %56 = vector.load %arg5[%c0_9, %c0_10] : memref<32x32xf32, #tpu.memory_space<vmem>>, vector<32x32xf32>
    %57 = vector.shape_cast %56 : vector<32x32xf32> to vector<1x32x32xf32>
    %58 = vector.broadcast %57 : vector<1x32x32xf32> to vector<4x32x32xf32>
    %59 = arith.addf %55, %58 : vector<4x32x32xf32>
    %cst_11 = arith.constant dense<0xFF800000> : vector<4x32xf32>
    %60 = vector.multi_reduction <maximumf>, %59, %cst_11 [2] : vector<4x32x32xf32> to vector<4x32xf32>
    %61 = vector.shape_cast %60 : vector<4x32xf32> to vector<4x32x1xf32>
    %62 = vector.broadcast %61 : vector<4x32x1xf32> to vector<4x32x32xf32>
    %63 = arith.subf %59, %62 : vector<4x32x32xf32>
    %64 = math.exp %63 : vector<4x32x32xf32>
    %cst_12 = arith.constant dense<0.000000e+00> : vector<4x32xf32>
    %65 = vector.multi_reduction <add>, %64, %cst_12 [2] : vector<4x32x32xf32> to vector<4x32xf32>
    %66 = vector.shape_cast %65 : vector<4x32xf32> to vector<4x32x1xf32>
    %67 = tpu.reciprocal %66 {approx = true} : vector<4x32x1xf32> -> vector<4x32x1xf32>
    %68 = vector.broadcast %67 : vector<4x32x1xf32> to vector<4x32x32xf32>
    %69 = arith.mulf %64, %68 : vector<4x32x32xf32>
    %70 = arith.truncf %69 : vector<4x32x32xf32> to vector<4x32x32xbf16>
    "tpu.trace_start"() <{level = 10 : i32, message = "hqk,hkd->hqd"}> : () -> ()
    %cst_13 = arith.constant dense<0.000000e+00> : vector<4x32x8xf32>
    %71 = tpu.matmul %70, %54, %cst_13 {dimension_numbers = #tpu.dot_dimension_numbers<[2], [1], [1], [2], [0, 0, 0, 1, 1, 2], [0], [0]>} : vector<4x32x32xbf16>, vector<4x32x8xbf16>, vector<4x32x8xf32> -> vector<4x32x8xf32>
    "tpu.trace_stop"() : () -> ()
    %72 = vector.extract_strided_slice %71 {offsets = [0, 0, 0], sizes = [1, 32, 8], strides = [1, 1, 1]} : vector<4x32x8xf32> to vector<1x32x8xf32>
    %73 = vector.shape_cast %72 : vector<1x32x8xf32> to vector<32x8xf32>
    %74 = vector.extract_strided_slice %71 {offsets = [1, 0, 0], sizes = [1, 32, 8], strides = [1, 1, 1]} : vector<4x32x8xf32> to vector<1x32x8xf32>
    %75 = vector.shape_cast %74 : vector<1x32x8xf32> to vector<32x8xf32>
    %76 = vector.extract_strided_slice %71 {offsets = [2, 0, 0], sizes = [1, 32, 8], strides = [1, 1, 1]} : vector<4x32x8xf32> to vector<1x32x8xf32>
    %77 = vector.shape_cast %76 : vector<1x32x8xf32> to vector<32x8xf32>
    %78 = vector.extract_strided_slice %71 {offsets = [3, 0, 0], sizes = [1, 32, 8], strides = [1, 1, 1]} : vector<4x32x8xf32> to vector<1x32x8xf32>
    %79 = vector.shape_cast %78 : vector<1x32x8xf32> to vector<32x8xf32>
    %80 = tpu.concatenate %73, %75, %77, %79 in 1 : vector<32x8xf32>, vector<32x8xf32>, vector<32x8xf32>, vector<32x8xf32> -> vector<32x32xf32>
    %81 = arith.truncf %80 : vector<32x32xf32> to vector<32x32xbf16>
    %c0_14 = arith.constant 0 : index
    %c0_15 = arith.constant 0 : index
    %c0_16 = arith.constant 0 : index
    %82 = vector.load %arg8[%c0_14, %c0_15, %c0_16] : memref<1x32x32xbf16, #tpu.memory_space<vmem>>, vector<1x32x32xbf16>
    %83 = vector.shape_cast %82 : vector<1x32x32xbf16> to vector<32x32xbf16>
    %cst_17 = arith.constant dense<0.000000e+00> : vector<32x32xf32>
    %84 = tpu.matmul %81, %83, %cst_17 {dimension_numbers = #tpu.dot_dimension_numbers<[1], [0], [0], [1], [0, 0, 1, 1], [], []>} : vector<32x32xbf16>, vector<32x32xbf16>, vector<32x32xf32> -> vector<32x32xf32>
    %c0_18 = arith.constant 0 : index
    %c0_19 = arith.constant 0 : index
    %c0_20 = arith.constant 0 : index
    %85 = vector.load %arg9[%c0_18, %c0_19, %c0_20] : memref<1x1x32xf32, #tpu.memory_space<vmem>>, vector<1x1x32xf32>
    %86 = vector.shape_cast %85 : vector<1x1x32xf32> to vector<1x32xf32>
    %87 = vector.broadcast %86 : vector<1x32xf32> to vector<32x32xf32>
    %88 = arith.addf %84, %87 : vector<32x32xf32>
    %89 = arith.addf %3, %88 : vector<32x32xf32>
    %c0_21 = arith.constant 0 : index
    %c0_22 = arith.constant 0 : index
    %c0_23 = arith.constant 0 : index
    %90 = vector.load %arg10[%c0_21, %c0_22, %c0_23] : memref<1x1x32xf32, #tpu.memory_space<vmem>>, vector<1x1x32xf32>
    %91 = vector.shape_cast %90 : vector<1x1x32xf32> to vector<1x32xf32>
    %c0_24 = arith.constant 0 : index
    %c0_25 = arith.constant 0 : index
    %c0_26 = arith.constant 0 : index
    %92 = vector.load %arg11[%c0_24, %c0_25, %c0_26] : memref<1x1x32xf32, #tpu.memory_space<vmem>>, vector<1x1x32xf32>
    %93 = vector.shape_cast %92 : vector<1x1x32xf32> to vector<1x32xf32>
    %cst_27 = arith.constant dense<0.000000e+00> : vector<32xf32>
    %94 = vector.multi_reduction <add>, %89, %cst_27 [1] : vector<32x32xf32> to vector<32xf32>
    %95 = vector.shape_cast %94 : vector<32xf32> to vector<32x1xf32>
    %cst_28 = arith.constant 3.125000e-02 : f32
    %96 = vector.broadcast %cst_28 : f32 to vector<32x1xf32>
    %97 = arith.mulf %95, %96 : vector<32x1xf32>
    %98 = arith.mulf %89, %89 : vector<32x32xf32>
    %cst_29 = arith.constant dense<0.000000e+00> : vector<32xf32>
    %99 = vector.multi_reduction <add>, %98, %cst_29 [1] : vector<32x32xf32> to vector<32xf32>
    %100 = vector.shape_cast %99 : vector<32xf32> to vector<32x1xf32>
    %cst_30 = arith.constant 3.125000e-02 : f32
    %101 = vector.broadcast %cst_30 : f32 to vector<32x1xf32>
    %102 = arith.mulf %100, %101 : vector<32x1xf32>
    %103 = arith.mulf %97, %97 : vector<32x1xf32>
    %104 = arith.subf %102, %103 : vector<32x1xf32>
    %105 = vector.broadcast %97 : vector<32x1xf32> to vector<32x32xf32>
    %106 = arith.subf %89, %105 : vector<32x32xf32>
    %cst_31 = arith.constant 9.99999974E-6 : f32
    %107 = vector.broadcast %cst_31 : f32 to vector<32x1xf32>
    %108 = arith.addf %104, %107 : vector<32x1xf32>
    %109 = math.rsqrt %108 : vector<32x1xf32>
    %110 = vector.broadcast %109 : vector<32x1xf32> to vector<32x32xf32>
    %111 = arith.mulf %106, %110 : vector<32x32xf32>
    %112 = vector.broadcast %91 : vector<1x32xf32> to vector<32x32xf32>
    %113 = arith.mulf %111, %112 : vector<32x32xf32>
    %114 = vector.broadcast %93 : vector<1x32xf32> to vector<32x32xf32>
    %115 = arith.addf %113, %114 : vector<32x32xf32>
    %116 = arith.truncf %115 : vector<32x32xf32> to vector<32x32xbf16>
    %c0_32 = arith.constant 0 : index
    %c0_33 = arith.constant 0 : index
    %c0_34 = arith.constant 0 : index
    %117 = vector.load %arg12[%c0_32, %c0_33, %c0_34] : memref<1x32x128xbf16, #tpu.memory_space<vmem>>, vector<1x32x128xbf16>
    %118 = vector.shape_cast %117 : vector<1x32x128xbf16> to vector<32x128xbf16>
    %cst_35 = arith.constant dense<0.000000e+00> : vector<32x128xf32>
    %119 = tpu.matmul %116, %118, %cst_35 {dimension_numbers = #tpu.dot_dimension_numbers<[1], [0], [0], [1], [0, 0, 1, 1], [], []>} : vector<32x32xbf16>, vector<32x128xbf16>, vector<32x128xf32> -> vector<32x128xf32>
    %c0_36 = arith.constant 0 : index
    %c0_37 = arith.constant 0 : index
    %c0_38 = arith.constant 0 : index
    %120 = vector.load %arg13[%c0_36, %c0_37, %c0_38] : memref<1x1x128xf32, #tpu.memory_space<vmem>>, vector<1x1x128xf32>
    %121 = vector.shape_cast %120 : vector<1x1x128xf32> to vector<1x128xf32>
    %122 = vector.broadcast %121 : vector<1x128xf32> to vector<32x128xf32>
    %123 = arith.addf %119, %122 : vector<32x128xf32>
    %cst_39 = arith.constant 0.000000e+00 : f32
    %124 = vector.broadcast %cst_39 : f32 to vector<32x128xf32>
    %125 = arith.maximumf %123, %124 : vector<32x128xf32>
    %126 = arith.truncf %125 : vector<32x128xf32> to vector<32x128xbf16>
    %c0_40 = arith.constant 0 : index
    %c0_41 = arith.constant 0 : index
    %c0_42 = arith.constant 0 : index
    %127 = vector.load %arg14[%c0_40, %c0_41, %c0_42] : memref<1x128x32xbf16, #tpu.memory_space<vmem>>, vector<1x128x32xbf16>
    %128 = vector.shape_cast %127 : vector<1x128x32xbf16> to vector<128x32xbf16>
    %cst_43 = arith.constant dense<0.000000e+00> : vector<32x32xf32>
    %129 = tpu.matmul %126, %128, %cst_43 {dimension_numbers = #tpu.dot_dimension_numbers<[1], [0], [0], [1], [0, 0, 1, 1], [], []>} : vector<32x128xbf16>, vector<128x32xbf16>, vector<32x32xf32> -> vector<32x32xf32>
    %c0_44 = arith.constant 0 : index
    %c0_45 = arith.constant 0 : index
    %c0_46 = arith.constant 0 : index
    %130 = vector.load %arg15[%c0_44, %c0_45, %c0_46] : memref<1x1x32xf32, #tpu.memory_space<vmem>>, vector<1x1x32xf32>
    %131 = vector.shape_cast %130 : vector<1x1x32xf32> to vector<1x32xf32>
    %132 = vector.broadcast %131 : vector<1x32xf32> to vector<32x32xf32>
    %133 = arith.addf %129, %132 : vector<32x32xf32>
    %134 = arith.addf %115, %133 : vector<32x32xf32>
    %c0_47 = arith.constant 0 : index
    %c0_48 = arith.constant 0 : index
    %c0_49 = arith.constant 0 : index
    %135 = vector.load %arg16[%c0_47, %c0_48, %c0_49] : memref<1x1x32xf32, #tpu.memory_space<vmem>>, vector<1x1x32xf32>
    %136 = vector.shape_cast %135 : vector<1x1x32xf32> to vector<1x32xf32>
    %c0_50 = arith.constant 0 : index
    %c0_51 = arith.constant 0 : index
    %c0_52 = arith.constant 0 : index
    %137 = vector.load %arg17[%c0_50, %c0_51, %c0_52] : memref<1x1x32xf32, #tpu.memory_space<vmem>>, vector<1x1x32xf32>
    %138 = vector.shape_cast %137 : vector<1x1x32xf32> to vector<1x32xf32>
    %cst_53 = arith.constant dense<0.000000e+00> : vector<32xf32>
    %139 = vector.multi_reduction <add>, %134, %cst_53 [1] : vector<32x32xf32> to vector<32xf32>
    %140 = vector.shape_cast %139 : vector<32xf32> to vector<32x1xf32>
    %cst_54 = arith.constant 3.125000e-02 : f32
    %141 = vector.broadcast %cst_54 : f32 to vector<32x1xf32>
    %142 = arith.mulf %140, %141 : vector<32x1xf32>
    %143 = arith.mulf %134, %134 : vector<32x32xf32>
    %cst_55 = arith.constant dense<0.000000e+00> : vector<32xf32>
    %144 = vector.multi_reduction <add>, %143, %cst_55 [1] : vector<32x32xf32> to vector<32xf32>
    %145 = vector.shape_cast %144 : vector<32xf32> to vector<32x1xf32>
    %cst_56 = arith.constant 3.125000e-02 : f32
    %146 = vector.broadcast %cst_56 : f32 to vector<32x1xf32>
    %147 = arith.mulf %145, %146 : vector<32x1xf32>
    %148 = arith.mulf %142, %142 : vector<32x1xf32>
    %149 = arith.subf %147, %148 : vector<32x1xf32>
    %150 = vector.broadcast %142 : vector<32x1xf32> to vector<32x32xf32>
    %151 = arith.subf %134, %150 : vector<32x32xf32>
    %cst_57 = arith.constant 9.99999974E-6 : f32
    %152 = vector.broadcast %cst_57 : f32 to vector<32x1xf32>
    %153 = arith.addf %149, %152 : vector<32x1xf32>
    %154 = math.rsqrt %153 : vector<32x1xf32>
    %155 = vector.broadcast %154 : vector<32x1xf32> to vector<32x32xf32>
    %156 = arith.mulf %151, %155 : vector<32x32xf32>
    %157 = vector.broadcast %136 : vector<1x32xf32> to vector<32x32xf32>
    %158 = arith.mulf %156, %157 : vector<32x32xf32>
    %159 = vector.broadcast %138 : vector<1x32xf32> to vector<32x32xf32>
    %160 = arith.addf %158, %159 : vector<32x32xf32>
    %c0_58 = arith.constant 0 : index
    %c0_59 = arith.constant 0 : index
    %161 = vector.load %arg21[%c0_58, %c0_59] : memref<32x32xf32, #tpu.memory_space<vmem>>, vector<32x32xf32>
    tpu.vector_store %arg21[%c0_58, %c0_59], %160 {strides = array<i32>} : memref<32x32xf32, #tpu.memory_space<vmem>>, vector<32x32xf32>,
    %c2_i32 = arith.constant 2 : i32
    %162 = arith.cmpi eq, %arg0, %c2_i32 : i32
    %163 = arith.extui %162 : i1 to i32
    %c0_i32_60 = arith.constant 0 : i32
    %164 = arith.cmpi ne, %163, %c0_i32_60 : i32
    scf.if %164 {
      %165 = arith.truncf %160 : vector<32x32xf32> to vector<32x32xbf16>
      %c0_61 = arith.constant 0 : index
      %c0_62 = arith.constant 0 : index
      %166 = vector.load %arg18[%c0_61, %c0_62] : memref<32x128xbf16, #tpu.memory_space<vmem>>, vector<32x128xbf16>
      %cst_63 = arith.constant dense<0.000000e+00> : vector<32x128xf32>
      %167 = tpu.matmul %165, %166, %cst_63 {dimension_numbers = #tpu.dot_dimension_numbers<[1], [0], [0], [1], [0, 0, 1, 1], [], []>} : vector<32x32xbf16>, vector<32x128xbf16>, vector<32x128xf32> -> vector<32x128xf32>
      %c0_64 = arith.constant 0 : index
      %c0_65 = arith.constant 0 : index
      %168 = vector.load %arg19[%c0_64, %c0_65] : memref<1x128xf32, #tpu.memory_space<vmem>>, vector<1x128xf32>
      %169 = vector.broadcast %168 : vector<1x128xf32> to vector<32x128xf32>
      %170 = arith.addf %167, %169 : vector<32x128xf32>
      %c0_66 = arith.constant 0 : index
      %c0_67 = arith.constant 0 : index
      %171 = vector.load %arg20[%c0_66, %c0_67] : memref<32x128xf32, #tpu.memory_space<vmem>>, vector<32x128xf32>
      tpu.vector_store %arg20[%c0_66, %c0_67], %170 {strides = array<i32>} : memref<32x128xf32, #tpu.memory_space<vmem>>, vector<32x128xf32>,
    } else {
    }
    return
  }
  func.func @transform_0(%arg0: i32) -> (i32, i32) {
    %c0_i32 = arith.constant 0 : i32
    %c0_i32_0 = arith.constant 0 : i32
    %c0_i32_1 = arith.constant 0 : i32
    return %c0_i32, %c0_i32_0 : i32, i32
  }
  func.func @transform_1(%arg0: i32) -> (i32, i32) {
    %c0_i32 = arith.constant 0 : i32
    %c0_i32_0 = arith.constant 0 : i32
    %c0_i32_1 = arith.constant 0 : i32
    return %c0_i32, %c0_i32_0 : i32, i32
  }
  func.func @transform_2(%arg0: i32) -> (i32, i32) {
    %c0_i32 = arith.constant 0 : i32
    %c0_i32_0 = arith.constant 0 : i32
    %c0_i32_1 = arith.constant 0 : i32
    return %c0_i32, %c0_i32_0 : i32, i32
  }
  func.func @transform_3(%arg0: i32) -> (i32, i32) {
    %c0_i32 = arith.constant 0 : i32
    %c0_i32_0 = arith.constant 0 : i32
    %c0_i32_1 = arith.constant 0 : i32
    return %c0_i32, %c0_i32_0 : i32, i32
  }
  func.func @transform_4(%arg0: i32) -> (i32, i32) {
    %c0_i32 = arith.constant 0 : i32
    %c0_i32_0 = arith.constant 0 : i32
    %c0_i32_1 = arith.constant 0 : i32
    return %c0_i32, %c0_i32_0 : i32, i32
  }
  func.func @transform_5(%arg0: i32) -> (i32, i32, i32) {
    %c0_i32 = arith.constant 0 : i32
    %c0_i32_0 = arith.constant 0 : i32
    %c0_i32_1 = arith.constant 0 : i32
    return %arg0, %c0_i32, %c0_i32_0 : i32, i32, i32
  }
  func.func @transform_6(%arg0: i32) -> (i32, i32, i32) {
    %c0_i32 = arith.constant 0 : i32
    %c0_i32_0 = arith.constant 0 : i32
    %c0_i32_1 = arith.constant 0 : i32
    return %arg0, %c0_i32, %c0_i32_0 : i32, i32, i32
  }
  func.func @transform_7(%arg0: i32) -> (i32, i32, i32) {
    %c0_i32 = arith.constant 0 : i32
    %c0_i32_0 = arith.constant 0 : i32
    %c0_i32_1 = arith.constant 0 : i32
    return %arg0, %c0_i32, %c0_i32_0 : i32, i32, i32
  }
  func.func @transform_8(%arg0: i32) -> (i32, i32, i32) {
    %c0_i32 = arith.constant 0 : i32
    %c0_i32_0 = arith.constant 0 : i32
    %c0_i32_1 = arith.constant 0 : i32
    return %arg0, %c0_i32, %c0_i32_0 : i32, i32, i32
  }
  func.func @transform_9(%arg0: i32) -> (i32, i32, i32) {
    %c0_i32 = arith.constant 0 : i32
    %c0_i32_0 = arith.constant 0 : i32
    %c0_i32_1 = arith.constant 0 : i32
    return %arg0, %c0_i32, %c0_i32_0 : i32, i32, i32
  }
  func.func @transform_10(%arg0: i32) -> (i32, i32, i32) {
    %c0_i32 = arith.constant 0 : i32
    %c0_i32_0 = arith.constant 0 : i32
    %c0_i32_1 = arith.constant 0 : i32
    return %arg0, %c0_i32, %c0_i32_0 : i32, i32, i32
  }
  func.func @transform_11(%arg0: i32) -> (i32, i32, i32) {
    %c0_i32 = arith.constant 0 : i32
    %c0_i32_0 = arith.constant 0 : i32
    %c0_i32_1 = arith.constant 0 : i32
    return %arg0, %c0_i32, %c0_i32_0 : i32, i32, i32
  }
  func.func @transform_12(%arg0: i32) -> (i32, i32, i32) {
    %c0_i32 = arith.constant 0 : i32
    %c0_i32_0 = arith.constant 0 : i32
    %c0_i32_1 = arith.constant 0 : i32
    return %arg0, %c0_i32, %c0_i32_0 : i32, i32, i32
  }
  func.func @transform_13(%arg0: i32) -> (i32, i32, i32) {
    %c0_i32 = arith.constant 0 : i32
    %c0_i32_0 = arith.constant 0 : i32
    %c0_i32_1 = arith.constant 0 : i32
    return %arg0, %c0_i32, %c0_i32_0 : i32, i32, i32
  }
  func.func @transform_14(%arg0: i32) -> (i32, i32, i32) {
    %c0_i32 = arith.constant 0 : i32
    %c0_i32_0 = arith.constant 0 : i32
    %c0_i32_1 = arith.constant 0 : i32
    return %arg0, %c0_i32, %c0_i32_0 : i32, i32, i32
  }
  func.func @transform_15(%arg0: i32) -> (i32, i32, i32) {
    %c0_i32 = arith.constant 0 : i32
    %c0_i32_0 = arith.constant 0 : i32
    %c0_i32_1 = arith.constant 0 : i32
    return %arg0, %c0_i32, %c0_i32_0 : i32, i32, i32
  }
  func.func @transform_16(%arg0: i32) -> (i32, i32, i32) {
    %c0_i32 = arith.constant 0 : i32
    %c0_i32_0 = arith.constant 0 : i32
    %c0_i32_1 = arith.constant 0 : i32
    return %arg0, %c0_i32, %c0_i32_0 : i32, i32, i32
  }
  func.func @transform_17(%arg0: i32) -> (i32, i32) {
    %c0_i32 = arith.constant 0 : i32
    %c0_i32_0 = arith.constant 0 : i32
    %c0_i32_1 = arith.constant 0 : i32
    return %c0_i32, %c0_i32_0 : i32, i32
  }
  func.func @transform_18(%arg0: i32) -> (i32, i32) {
    %c0_i32 = arith.constant 0 : i32
    %c0_i32_0 = arith.constant 0 : i32
    %c0_i32_1 = arith.constant 0 : i32
    return %c0_i32, %c0_i32_0 : i32, i32
  }
  func.func @transform_19(%arg0: i32) -> (i32, i32) {
    %c0_i32 = arith.constant 0 : i32
    %c0_i32_0 = arith.constant 0 : i32
    %c0_i32_1 = arith.constant 0 : i32
    return %c0_i32, %c0_i32_0 : i32, i32
  }
}

</mosaic_0001>

<bundles_post_ra>
// kernel: vanilla_transformer_encoder_forward.1
= control target key start
LH: loop header
LB: loop body
LE: loop exit
PB: predicated region body
PF: predicated region fallthrough
CT: control target
= control target key end

     0   :  { %s4112_s0 = inlined_call_operand.vmem [shape: f32[32,128], index: 0, kind: input, shape index: {}]   ;;  %s4113_s1 = inlined_call_operand.vmem [shape: bf16[128,32], index: 1, kind: input, shape index: {}]   ;;  %s4114_s2 = inlined_call_operand.vmem [shape: f32[1,32], index: 2, kind: input, shape index: {}]   ;;  %s4115_s3 = inlined_call_operand.vmem [shape: f32[32,32], index: 3, kind: input, shape index: {}]   ;;  %s4116_s4 = inlined_call_operand.vmem [shape: f32[32,32], index: 4, kind: input, shape index: {}]   ;;  %s4117_s5 = inlined_call_operand.vmem [shape: bf16[3,32,96], index: 5, kind: input, shape index: {}]   ;;  %s4118_s6 = inlined_call_operand.vmem [shape: f32[3,1,96], index: 6, kind: input, shape index: {}]   ;;  %s4119_s7 = inlined_call_operand.vmem [shape: bf16[3,32,32], index: 7, kind: input, shape index: {}]   ;;  %s4120_s8 = inlined_call_operand.vmem [shape: f32[3,1,32], index: 8, kind: input, shape index: {}]   ;;  %s4121_s9 = inlined_call_operand.vmem [shape: f32[3,1,32], index: 9, kind: input, shape index: {}]   ;;  %s4122_s10 = inlined_call_operand.vmem [shape: f32[3,1,32], index: 10, kind: input, shape index: {}]   ;;  %s4123_s11 = inlined_call_operand.vmem [shape: bf16[3,32,128], index: 11, kind: input, shape index: {}]   ;;  %s4124_s12 = inlined_call_operand.vmem [shape: f32[3,1,128], index: 12, kind: input, shape index: {}]   ;;  %s4125_s13 = inlined_call_operand.vmem [shape: bf16[3,128,32], index: 13, kind: input, shape index: {}]   ;;  %s4126_s14 = inlined_call_operand.vmem [shape: f32[3,1,32], index: 14, kind: input, shape index: {}]   ;;  %s4127_s15 = inlined_call_operand.vmem [shape: f32[3,1,32], index: 15, kind: input, shape index: {}]   ;;  %s4128_s16 = inlined_call_operand.vmem [shape: f32[3,1,32], index: 16, kind: input, shape index: {}]   ;;  %s4129_s17 = inlined_call_operand.vmem [shape: bf16[32,128], index: 17, kind: input, shape index: {}]   ;;  %s4130_s18 = inlined_call_operand.vmem [shape: f32[1,128], index: 18, kind: input, shape index: {}]   ;;  %s4131_s19 = inlined_call_operand.hbm [shape: f32[32,128], index: 19, kind: output, shape index: {}]  }
   0x1   :  { %4139 = sst [smem:[#allocation8_spill]] %s4112_s0 }
   0x2   :  { %4140 = sst [smem:[#allocation9_spill]] %s4113_s1 }
   0x3   :  { %4141 = sst [smem:[#allocation10_spill]] %s4114_s2 }
   0x4   :  { %4142 = sst [smem:[#allocation11_spill]] %s4115_s3 }
   0x5   :  { %4143 = sst [smem:[#allocation12_spill]] %s4117_s5 }
   0x6   :  { %4144 = sst [smem:[#allocation13_spill]] %s4119_s7 }
   0x7   :  { %4145 = sst [smem:[#allocation14_spill]] %s4129_s17 }
   0x8   :  { %4146 = sst [smem:[#allocation15_spill]] %s4130_s18 }
   0x9   :  { %4147 = sst [smem:[#allocation16_spill]] %s4131_s19 }
   0xa   :  { %24 = vsyncpa [#allocation4], 0  ;;  %s3576_s0 = smov 0  }
   0xb LB: > { %4148 = sst [smem:[#allocation6_spill]] %s3469_s0  ;;  %s3582_s30 = sadd.s32 4294967295, %s3469_s0   ;;  %s3469_s0 = sphi %s3576_s0, %s30_s0  }
   0xc   : > { %p2854_p0 = scmp.ge.s32.totalorder %s3469_s0, 1  ;;  %p627_p1 = scmp.lt.s32.totalorder %s3469_s0, 4 }
   0xe   : > { %p628_p2 = pnand %p2854_p0, %p627_p1 }
  0x10   : > { %631 = sbr.rel (%p628_p2) target bundleno = 3074 (0xc02), region = 96 }
  0x17   : > { %p717_p3 = scmp.lt.s32.totalorder %s3582_s30, 2  ;;  %s4149_s5 = sld [smem:[#allocation12_spill]] }
  0x18   : > { %s4150_s7 = sld [smem:[#allocation13_spill]]  ;;  %p2863_p4 = scmp.ne.s32.totalorder %s3582_s30, 0 }
  0x19   : > { %s3588_s20 = scalar_select %p717_p3, %s3582_s30, 2 }
  0x1a   : > { %765 = sbr.rel (%p2863_p4) target bundleno = 285 (0x11d), region = 100  ;;  %s4152_s28 = sld [smem:[#allocation9_spill]] (!%p2863_p4)  ;;  %vm900_vm0 = vcmask (!%p2863_p4), 261120  }
  0x1b   : > { %s2927_s21 = sshll.u32 %s3588_s20, 4  ;;  %s754_s1 = scalar_lea.vmem %s4126_s14, %s3588_s20 }
  0x1c   : > { %s757_s23 = scalar_lea.vmem %s4127_s15, %s3588_s20  ;;  %s4153_s3 = sld [smem:[#allocation8_spill]] (!%p2863_p4) }
  0x1d   : > { %s3598_s25 = scalar_lea.vmem %s4149_s5, %s2927_s21  ;;  %s3620_s5 = scalar_lea.vmem %s4123_s11, %s2927_s21 }
  0x1e   : > { %s3603_s27 = scalar_lea.vmem %s4150_s7, %s2927_s21  ;;  %s746_s7 = scalar_lea.vmem %s4124_s12, %s3588_s20 }
  0x1f   : > { %4151 = sst [smem:[#allocation7_spill]] %s3603_s27  ;;  %s2930_s27 = sshll.u32 %s3588_s20, 6 }
  0x20   : > { %s3630_s0 = scalar_lea.vmem %s4125_s13, %s2930_s27  ;;  %v3163_v0 = vld [vmem:[%s4152_s28] sm:$0xff] (!%p2863_p4)   ;;  %v3164_v1 = vld [vmem:[%s4152_s28 + $0x8] sm:$0xff] (!%p2863_p4)   ;;  %v3165_v2 = vld [vmem:[%s4152_s28 + $0x10] sm:$0xff] (!%p2863_p4)   ;;  %s4154_s21 = sld [smem:[#allocation10_spill]] (!%p2863_p4) }
  0x21   : > { %2999 = vmatprep.subr.bf16.mxu0 %v3163_v0  ;;  %v3166_v3 = vld [vmem:[%s4152_s28 + $0x18] sm:$0xff]   ;;  %v3167_v7 = vld [vmem:[%s4152_s28 + $0x20] sm:$0xff]   ;;  %v3168_v8 = vld [vmem:[%s4152_s28 + $0x28] sm:$0xff]   ;;  %s4155_s17 = sld [smem:[#allocation11_spill]] }
  0x22   : > { %3000 = vmatpush3.bf16.msra.mxu0 %v3163_v0  ;;  %v766_v4 = vld [vmem:[%s4153_s3] sm:$0xff]  ;;  %v767_v5 = vld [vmem:[%s4153_s3 + $0x8] sm:$0xff]  ;;  %v3169_v9 = vld [vmem:[%s4152_s28 + $0x30] sm:$0xff]  }
  0x23   : > { %3001 = vmatprep.subr.bf16.mxu0 %v3164_v1  ;;  %v770_v6 = vpack.c.bf16 %v767_v5, %v766_v4  ;;  %v3170_v10 = vld [vmem:[%s4152_s28 + $0x38] sm:$0xff]   ;;  %v768_v11 = vld [vmem:[%s4153_s3 + $0x10] sm:$0xff] }
  0x24   : > { %v769_v12 = vld [vmem:[%s4153_s3 + $0x18] sm:$0xff] }
  0x25   : > { %3015 = vmatprep.mubr.bf16.mxu0 %v770_v6  ;;  %v771_v13 = vpack.c.bf16 %v769_v12, %v768_v11 }
  0x26   : > { %3002 = vmatpush3.bf16.msra.mxu0 %v3164_v1  ;;  %v2864_v14 = vld [vmem:[%s4154_s21] ss:$0 sm:$0xff] }
  0x27   : > { %3003 = vmatprep.subr.bf16.mxu0 %v3165_v2  ;;  %v894_v16 = vld [vmem:[%s4155_s17 + $0x10] sm:$0xff]  ;;  %v892_v19 = vld [vmem:[%s4155_s17] sm:$0xff]  ;;  %v895_v22 = vld [vmem:[%s4155_s17 + $0x18] sm:$0xff] }
  0x28   : > { %v893_v26 = vld [vmem:[%s4155_s17 + $0x8] sm:$0xff] }
  0x2a   : > { %3004 = vmatpush3.bf16.msra.mxu0 %v3165_v2 }
  0x2b   : > { %3005 = vmatprep.subr.bf16.mxu0 %v3166_v3 }
  0x2e   : > { %3006 = vmatpush3.bf16.msra.mxu0 %v3166_v3 }
  0x2f   : > { %3007 = vmatprep.subr.bf16.mxu0 %v3167_v7 }
  0x32   : > { %3008 = vmatpush3.bf16.msra.mxu0 %v3167_v7 }
  0x33   : > { %3009 = vmatprep.subr.bf16.mxu0 %v3168_v8 }
  0x36   : > { %3010 = vmatpush3.bf16.msra.mxu0 %v3168_v8 }
  0x37   : > { %3011 = vmatprep.subr.bf16.mxu0 %v3169_v9 }
  0x3a   : > { %3012 = vmatpush3.bf16.msra.mxu0 %v3169_v9 }
  0x3b   : > { %3013 = vmatprep.subr.bf16.mxu0 %v3170_v10 }
  0x3e   : > { %3014 = vmatpush3.bf16.msra.mxu0 %v3170_v10 }
  0x41   : > { %3016 = vmatmul.mubr.bf16.vlgmr.msra.gmra.mrb[0].mxu0 %v771_v13 }
 0x114   : > { %v3017_v15 = vpop.f32.mrb[0].mxu0 }
 0x115   : > { %v886_v17 = vadd.f32 %v3017_v15, %v2864_v14  ;;  %v877_v18 = vpop.f32.mrb[1].mxu0 }
 0x116   : > { %v878_v20 = vadd.f32 %v2864_v14, %v877_v18  ;;  %v3018_v21 = vpop.f32.mrb[2].mxu0 }
 0x117   : > { %v898_v23 = vadd.f32 %v894_v16, %v886_v17  ;;  %v889_v24 = vadd.f32 %v3018_v21, %v2864_v14  ;;  %v880_v25 = vpop.f32.mrb[3].mxu0 }
 0x118   : > { %v896_v27 = vadd.f32 %v892_v19, %v878_v20  ;;  %v881_v28 = vadd.f32 %v2864_v14, %v880_v25 }
 0x119   : > { %903 = vst.msk [vmem:[#allocation2 + $0x10] sm:$0xff] %vm900_vm0, %v898_v23  ;;  %v899_v29 = vadd.f32 %v895_v22, %v889_v24 }
 0x11a   : > { %901 = vst.msk [vmem:[#allocation2] sm:$0xff] %vm900_vm0, %v896_v27  ;;  %v897_v30 = vadd.f32 %v893_v26, %v881_v28 }
 0x11b   : > { %904 = vst.msk [vmem:[#allocation2 + $0x18] sm:$0xff] %vm900_vm0, %v899_v29 }
 0x11c   : > { %902 = vst.msk [vmem:[#allocation2 + $0x8] sm:$0xff] %vm900_vm0, %v897_v30 }
 0x11d PF: > { %v3333_v31 = vld [vmem:[%s3598_s25] sm:$0xff]   ;;  %v3334_v32 = vld [vmem:[%s3598_s25 + $0x8] sm:$0xff]   ;;  %vm934_vm1 = vcmask 261120   ;;  %s4156_s26 = scalar_lea.vmem %s4118_s6, %s3588_s20  ;;  %vm1434_vm2 = vcmask 64512   ;;  %s4157_s24 = sld [smem:[#allocation7_spill]]  ;;  %vm2135_vm3 = vcmask 130048  }
 0x11e   : > { %3019 = vmatprep.subr.bf16.mxu0 %v3333_v31  ;;  %v2873_v39 = vld [vmem:[%s4156_s26] ss:$0 sm:$0xff]  ;;  %s3471_s26 = smov 8   ;;  %s3472_s25 = smov 16   ;;  %vm2140_vm4 = vcmask 195584  }
 0x11f   : > { %3020 = vmatpush3.bf16.msra.mxu0 %v3333_v31  ;;  %s3473_s27 = smov 24   ;;  %s4158_s18 = scalar_lea.vmem %s4120_s8, %s3588_s20 }
 0x120   : > { %v907_v35 = vld [vmem:[#allocation2 + $0x10] sm:$0xff]  ;;  %3021 = vmatprep.subr.bf16.mxu0 %v3334_v32  ;;  %s4159_s22 = scalar_lea.vmem %s4121_s9, %s3588_s20  ;;  %s4161_s19 = scalar_lea.vmem %s4128_s16, %s3588_s20 }
 0x121   : > { %v905_v33 = vld [vmem:[#allocation2] sm:$0xff]  ;;  %p2917_p5 = scmp.ne.s32.totalorder %s3582_s30, 2 }
 0x122   : > { %v908_v37 = vld [vmem:[#allocation2 + $0x18] sm:$0xff]  ;;  %s4163_s29 = sld [smem:[#allocation15_spill]] (!%p2917_p5) }
 0x123   : > { %v906_v34 = vld [vmem:[#allocation2 + $0x8] sm:$0xff]  ;;  %v910_v38 = vpack.c.bf16 %v908_v37, %v907_v35  ;;  %3022 = vmatpush3.bf16.msra.mxu0 %v3334_v32 }
 0x124   : > { %v909_v36 = vpack.c.bf16 %v906_v34, %v905_v33 }
 0x126   : > { %3023 = vmatprep.mubr.msk.bf16.mxu0 %vm934_vm1, %v909_v36 }
 0x127   : > { %3024 = vmatmul.mubr.msk.bf16.vlgmr.msra.gmra.mrb[0].mxu0 %vm934_vm1, %v910_v38 }
 0x1fa   : > { %v3025_v40 = vpop.f32.mrb[0].mxu0 }
 0x1fb   : > { %v975_v41 = vpop.f32.mrb[1].mxu0  ;;  %v984_v46 = vadd.f32 %v3025_v40, %v2873_v39 }
 0x1fc   : > { %v3026_v42 = vpop.f32.mrb[2].mxu0  ;;  %v976_v43 = vadd.f32 %v2873_v39, %v975_v41 }
 0x1fd   : > { %v978_v44 = vpop.f32.mrb[3].mxu0  ;;  %v987_v47 = vadd.f32 %v3026_v42, %v2873_v39 }
 0x1fe   : > { %990 = vxpose.xlu0.b32.start [1/4] (short) (narrow) %v976_v43, 96  ;;  %v979_v45 = vadd.f32 %v2873_v39, %v978_v44 }
 0x202   : > { %991 = vxpose.xlu0.b32.cont [2/4] (short) (narrow) %v979_v45, 96 }
 0x206   : > { %992 = vxpose.xlu0.b32.cont [3/4] (short) (narrow) %v984_v46, 96 }
 0x20a   : > { %993 = vxpose.xlu0.b32.end [4/4] (short) (narrow) %v987_v47, 96 }
 0x27e   : > { %v1006_v48 = vpop.trf.xlu0 }
 0x282   : > { %v1007_v49 = vpop.trf.xlu0 }
 0x286   : > { %v1008_v50 = vpop.trf.xlu0 }
 0x28a   : > { %v1009_v51 = vpop.trf.xlu0 }
 0x28b   : > { %v3237_v62 = vpack.i.bf16 %v1009_v51, %v1008_v50 }
 0x28e   : > { %v1010_v52 = vpop.trf.xlu0 }
 0x28f   : > { %v3171_v53 = vpack.i.bf16 %v1006_v48, %v1010_v52 }
 0x291   : > { %3172 = vxpose.xlu1.b32.start.end [1/1] (short) (narrow) %v3171_v53, 32 }
 0x292   : > { %v1011_v54 = vpop.trf.xlu0 }
 0x293   : > { %v3193_v58 = vpack.i.bf16 %v1007_v49, %v1011_v54 }
 0x296   : > { %v1012_v55 = vpop.trf.xlu0 }
 0x29a   : > { %v1013_v56 = vpop.trf.xlu0 }
 0x29b   : > { %v3215_v57 = vpack.i.bf16 %v1013_v56, %v1012_v55 }
 0x29d   : > { %3216 = vxpose.xlu0.b32.start.end [1/1] (short) (narrow) %v3215_v57, 32 }
 0x29e   : > { %3194 = vxpose.xlu1.b32.start.end [1/1] (short) (narrow) %v3193_v58, 32  ;;  %v3705_v59 = vpop.trf.xlu0 }
 0x2a2   : > { %v3707_v60 = vpop.trf.xlu0 }
 0x2a3   : > { %v3259_v61 = vpack.i.bf16 %v3707_v60, %v3705_v59 }
 0x2a6   : > { %v3711_v0 = vpop.trf.xlu0 }
 0x2aa   : > { %v3713_v6 = vpop.trf.xlu0 }
 0x2ab   : > { %3238 = vxpose.xlu1.b32.start.end [1/1] (short) (narrow) %v3237_v62, 32 }
 0x311   : > { %v3173_v63 = vpop.trf.xlu1 }
 0x312   : > { %v3177_v1 = vunpack.i.h.bf16 %v3173_v63  ;;  %v3174_v2 = vunpack.i.l.bf16 %v3173_v63 }
 0x315   : > { %v3178_v3 = vpop.trf.xlu1 }
 0x316   : > { %v3182_v4 = vunpack.i.h.bf16 %v3178_v3  ;;  %v3179_v5 = vunpack.i.l.bf16 %v3178_v3 }
 0x318   : > { %v1286_v7 = vpack.c.bf16 %v3179_v5, %v3174_v2  ;;  %v1150_v8 = vpack.c.bf16 %v3182_v4, %v3177_v1 }
 0x319   : > { %v3183_v9 = vpop.trf.xlu1 }
 0x31a   : > { %3135 = vmatprep.subr.msk.bf16.mxu0 %vm1434_vm2, %v1286_v7  ;;  %3031 = vmatprep.mubr.msk.bf16.mxu0 %vm1434_vm2, %v1150_v8  ;;  %v1442_v10 = vsel %vm1434_vm2, %v1286_v7, 0  ;;  %v3184_v13 = vunpack.i.l.bf16 %v3183_v9  ;;  %v3187_v28 = vunpack.i.h.bf16 %v3183_v9 }
 0x31b   : > { %3028 = vmatpush3.bf16.xpose.msra.mxu0 %v1442_v10 }
 0x31d   : > { %v3188_v11 = vpop.trf.xlu1  ;;  %v3217_v12 = vpop.trf.xlu0 }
 0x31e   : > { %v3189_v14 = vunpack.i.l.bf16 %v3188_v11  ;;  %v3218_v20 = vunpack.i.l.bf16 %v3217_v12  ;;  %v3192_v21 = vunpack.i.h.bf16 %v3188_v11  ;;  %v3221_v42 = vunpack.i.h.bf16 %v3217_v12 }
 0x320   : > { %v1287_v15 = vpack.c.bf16 %v3189_v14, %v3184_v13  ;;  %v1151_v32 = vpack.c.bf16 %v3192_v21, %v3187_v28  ;;  %v3742_v14 = vld [vmem:[%s4116_s4 + $0x10] sm:$0xff] }
 0x321   : > { %v3195_v16 = vpop.trf.xlu1  ;;  %v3222_v17 = vpop.trf.xlu0 }
 0x322   : > { %3136 = vmatprep.subr.msk.bf16.mxu0 %vm1434_vm2, %v1287_v15  ;;  %v1445_v18 = vsel %vm1434_vm2, %v1287_v15, 0  ;;  %v3223_v19 = vunpack.i.l.bf16 %v3222_v17  ;;  %v3199_v22 = vunpack.i.h.bf16 %v3195_v16  ;;  %v3196_v23 = vunpack.i.l.bf16 %v3195_v16  ;;  %v1430_v16 = vld [vmem:[%s4116_s4] sm:$0xff] }
 0x323   : > { %3030 = vmatpush3.bf16.xpose.msra.mxu0 %v1445_v18  ;;  %v3226_v43 = vunpack.i.h.bf16 %v3222_v17 }
 0x324   : > { %v1290_v31 = vpack.c.bf16 %v3223_v19, %v3218_v20  ;;  %v1431_v19 = vld [vmem:[%s4116_s4 + $0x8] sm:$0xff] }
 0x325   : > { %v3200_v24 = vpop.trf.xlu1  ;;  %v3227_v25 = vpop.trf.xlu0  ;;  %v1292_v49 = vpack.c.bf16 %v3226_v43, %v3221_v42 }
 0x326   : > { %v3204_v26 = vunpack.i.h.bf16 %v3200_v24  ;;  %v3201_v27 = vunpack.i.l.bf16 %v3200_v24  ;;  %3139 = vmatprep.subr.msk.bf16.mxu1 %vm1434_vm2, %v1290_v31  ;;  %v3228_v36 = vunpack.i.l.bf16 %v3227_v25  ;;  %v1564_v37 = vsel %vm1434_vm2, %v1290_v31, 0  ;;  %v1433_v24 = vld [vmem:[%s4116_s4 + $0x18] sm:$0xff] }
 0x327   : > { %3044 = vmatpush3.bf16.xpose.msra.mxu1 %v1564_v37  ;;  %v3231_v57 = vunpack.i.h.bf16 %v3227_v25  ;;  %v1625_v3 = vsel %vm1434_vm2, %v1292_v49, 0 }
 0x328   : > { %v1288_v29 = vpack.c.bf16 %v3201_v27, %v3196_v23  ;;  %v1152_v30 = vpack.c.bf16 %v3204_v26, %v3199_v22 }
 0x329   : > { %v3205_v33 = vpop.trf.xlu1  ;;  %v3232_v34 = vpop.trf.xlu0 }
 0x32a   : > { %3137 = vmatprep.subr.msk.bf16.mxu0 %vm1434_vm2, %v1288_v29  ;;  %3032 = vmatmul.mubr.msk.bf16.vlgmr.msra.gmra.mrb[4].mxu0 %vm1434_vm2, %v1151_v32  ;;  %v1503_v35 = vsel %vm1434_vm2, %v1288_v29, 0  ;;  %v3233_v38 = vunpack.i.l.bf16 %v3232_v34  ;;  %v3206_v40 = vunpack.i.l.bf16 %v3205_v33  ;;  %v3209_v56 = vunpack.i.h.bf16 %v3205_v33 }
 0x32b   : > { %3036 = vmatpush3.bf16.xpose.msra.mxu0 %v1503_v35  ;;  %3039 = vmatprep.mubr.msk.bf16.mxu0 %vm1434_vm2, %v1152_v30  ;;  %v3236_v58 = vunpack.i.h.bf16 %v3232_v34 }
 0x32c   : > { %v1291_v44 = vpack.c.bf16 %v3233_v38, %v3228_v36 }
 0x32d   : > { %v3210_v39 = vpop.trf.xlu1  ;;  %v1293_v4 = vpack.c.bf16 %v3236_v58, %v3231_v57 }
 0x32e   : > { %v3211_v41 = vunpack.i.l.bf16 %v3210_v39  ;;  %3140 = vmatprep.subr.msk.bf16.mxu1 %vm1434_vm2, %v1291_v44  ;;  %v1567_v48 = vsel %vm1434_vm2, %v1291_v44, 0  ;;  %v3214_v50 = vunpack.i.h.bf16 %v3210_v39 }
 0x32f   : > { %3046 = vmatpush3.bf16.xpose.msra.mxu1 %v1567_v48  ;;  %v1628_v10 = vsel %vm1434_vm2, %v1293_v4, 0 }
 0x330   : > { %v1289_v45 = vpack.c.bf16 %v3211_v41, %v3206_v40  ;;  %v1153_v1 = vpack.c.bf16 %v3214_v50, %v3209_v56 }
 0x331   : > { %v3239_v46 = vpop.trf.xlu1 }
 0x332   : > { %3138 = vmatprep.subr.msk.bf16.mxu0 %vm1434_vm2, %v1289_v45  ;;  %v1506_v47 = vsel %vm1434_vm2, %v1289_v45, 0  ;;  %v3243_v51 = vunpack.i.h.bf16 %v3239_v46  ;;  %v3240_v53 = vunpack.i.l.bf16 %v3239_v46 }
 0x333   : > { %3038 = vmatpush3.bf16.xpose.msra.mxu0 %v1506_v47 }
 0x334   : > { %3141 = vmatprep.subr.msk.bf16.mxu0 %vm1434_vm2, %v1292_v49 }
 0x335   : > { %v3244_v52 = vpop.trf.xlu1 }
 0x336   : > { %v3248_v54 = vunpack.i.h.bf16 %v3244_v52  ;;  %v3245_v55 = vunpack.i.l.bf16 %v3244_v52 }
 0x338   : > { %v1154_v62 = vpack.c.bf16 %v3245_v55, %v3240_v53  ;;  %v1156_v63 = vpack.c.bf16 %v3248_v54, %v3243_v51 }
 0x339   : > { %v3249_v2 = vpop.trf.xlu1 }
 0x33a   : > { %3047 = vmatprep.mubr.msk.bf16.mxu1 %vm1434_vm2, %v1154_v62  ;;  %3040 = vmatmul.mubr.msk.bf16.vlgmr.msra.gmra.mrb[8].mxu0 %vm1434_vm2, %v1153_v1  ;;  %v3250_v7 = vunpack.i.l.bf16 %v3249_v2  ;;  %v3253_v12 = vunpack.i.h.bf16 %v3249_v2 }
 0x33b   : > { %3052 = vmatpush3.bf16.xpose.msra.mxu0 %v1625_v3  ;;  %3055 = vmatprep.mubr.msk.bf16.mxu0 %vm1434_vm2, %v1156_v63 }
 0x33c   : > { %3142 = vmatprep.subr.msk.bf16.mxu0 %vm1434_vm2, %v1293_v4 }
 0x33d   : > { %v3254_v5 = vpop.trf.xlu1 }
 0x33e   : > { %v3255_v8 = vunpack.i.l.bf16 %v3254_v5  ;;  %v3258_v11 = vunpack.i.h.bf16 %v3254_v5 }
 0x340   : > { %v1155_v9 = vpack.c.bf16 %v3255_v8, %v3250_v7  ;;  %v1157_v13 = vpack.c.bf16 %v3258_v11, %v3253_v12 }
 0x342   : > { %3048 = vmatmul.mubr.msk.bf16.vlgmr.msra.gmra.mrb[0].mxu1 %vm1434_vm2, %v1155_v9 }
 0x343   : > { %3054 = vmatpush3.bf16.xpose.msra.mxu0 %v1628_v10 }
 0x34a   : > { %3056 = vmatmul.mubr.msk.bf16.vlgmr.msra.gmra.mrb[12].mxu0 %vm1434_vm2, %v1157_v13 }
 0x3fd   : > { %v3033_v15 = vpop.f32.mrb[4].mxu0 }
 0x3fe   : > { %v3748_v17 = vadd.f32 %v3033_v15, %v3742_v14  ;;  %v1481_v18 = vpop.f32.mrb[5].mxu0 }
 0x3ff   : > { %v3034_v20 = vpop.f32.mrb[6].mxu0  ;;  %v3753_v21 = vadd.f32 %v1481_v18, %v1430_v16 }
 0x400   : > { %v1484_v22 = vpop.f32.mrb[7].mxu0  ;;  %v1685_v23 = vsel %vm934_vm1, %v3748_v17, -inf  ;;  %v3764_v27 = vadd.f32 %v3034_v20, %v1433_v24 }
 0x401   : > { %v3760_v25 = vadd.f32 %v1484_v22, %v1431_v19  ;;  %1686 = vmax.xlane.f32.xlu1 %v1685_v23  ;;  %v1679_v28 = vsel %vm934_vm1, %v3753_v21, -inf }
 0x402   : > { %v1688_v29 = vsel %vm934_vm1, %v3764_v27, -inf }
 0x403   : > { %v1682_v26 = vsel %vm934_vm1, %v3760_v25, -inf }
 0x404   : > { %1683 = vmax.xlane.f32.xlu0 %v1682_v26 }
 0x405   : > { %1680 = vmax.xlane.f32.xlu1 %v1679_v28 }
 0x409   : > { %1689 = vmax.xlane.f32.xlu1 %v1688_v29 }
 0x40d   : > { %v3041_v30 = vpop.f32.mrb[8].mxu0 }
 0x40e   : > { %v1542_v31 = vpop.f32.mrb[9].mxu0  ;;  %v3773_v39 = vadd.f32 %v3041_v30, %v3742_v14 }
 0x40f   : > { %v3042_v32 = vpop.f32.mrb[10].mxu0  ;;  %v3783_v44 = vadd.f32 %v1542_v31, %v1430_v16 }
 0x410   : > { %v1545_v33 = vpop.f32.mrb[11].mxu0  ;;  %v1697_v45 = vsel %vm934_vm1, %v3773_v39, -inf  ;;  %v3789_v50 = vadd.f32 %v3042_v32, %v1433_v24 }
 0x411   : > { %v1691_v52 = vsel %vm934_vm1, %v3783_v44, -inf  ;;  %v3799_v56 = vadd.f32 %v1545_v33, %v1431_v19 }
 0x412   : > { %v1700_v57 = vsel %vm934_vm1, %v3789_v50, -inf }
 0x413   : > { %v1694_v63 = vsel %vm934_vm1, %v3799_v56, -inf }
 0x415   : > { %v3049_v34 = vpop.f32.mrb[0].mxu1 }
 0x416   : > { %v1603_v35 = vpop.f32.mrb[1].mxu1  ;;  %v3806_v62 = vadd.f32 %v3049_v34, %v3742_v14 }
 0x417   : > { %v3770_v36 = vadd.f32 %v1603_v35, %v1430_v16  ;;  %v3050_v37 = vpop.f32.mrb[2].mxu1 }
 0x418   : > { %v1606_v38 = vpop.f32.mrb[3].mxu1  ;;  %v3779_v42 = vadd.f32 %v3050_v37, %v1433_v24  ;;  %v1709_v2 = vsel %vm934_vm1, %v3806_v62, -inf }
 0x419   : > { %v3775_v40 = vadd.f32 %v1606_v38, %v1431_v19  ;;  %v1703_v41 = vsel %vm934_vm1, %v3770_v36, -inf }
 0x41a   : > { %1704 = vmax.xlane.f32.xlu1 %v1703_v41  ;;  %v1712_v48 = vsel %vm934_vm1, %v3779_v42, -inf }
 0x41b   : > { %v1706_v43 = vsel %vm934_vm1, %v3775_v40, -inf }
 0x41c   : > { %1707 = vmax.xlane.f32.xlu0 %v1706_v43 }
 0x41d   : > { %v3057_v46 = vpop.f32.mrb[12].mxu0 }
 0x41e   : > { %1698 = vmax.xlane.f32.xlu1 %v1697_v45  ;;  %v1664_v47 = vpop.f32.mrb[13].mxu0  ;;  %v3815_v3 = vadd.f32 %v3057_v46, %v3742_v14 }
 0x41f   : > { %v3058_v49 = vpop.f32.mrb[14].mxu0  ;;  %v3810_v1 = vadd.f32 %v1664_v47, %v1430_v16 }
 0x420   : > { %1713 = vmax.xlane.f32.xlu0 %v1712_v48  ;;  %v1667_v51 = vpop.f32.mrb[15].mxu0  ;;  %v3795_v54 = vadd.f32 %v3058_v49, %v1433_v24  ;;  %v1721_v5 = vsel %vm934_vm1, %v3815_v3, -inf }
 0x421   : > { %v3793_v53 = vadd.f32 %v1667_v51, %v1431_v19  ;;  %v1715_v4 = vsel %vm934_vm1, %v3810_v1, -inf }
 0x422   : > { %1692 = vmax.xlane.f32.xlu1 %v1691_v52  ;;  %v1724_v58 = vsel %vm934_vm1, %v3795_v54, -inf }
 0x423   : > { %v1718_v55 = vsel %vm934_vm1, %v3793_v53, -inf }
 0x424   : > { %1719 = vmax.xlane.f32.xlu0 %v1718_v55 }
 0x426   : > { %1701 = vmax.xlane.f32.xlu1 %v1700_v57 }
 0x428   : > { %1725 = vmax.xlane.f32.xlu0 %v1724_v58 }
 0x42a   : > { %1695 = vmax.xlane.f32.xlu1 %v1694_v63 }
 0x42e   : > { %1710 = vmax.xlane.f32.xlu1 %v1709_v2 }
 0x432   : > { %1716 = vmax.xlane.f32.xlu1 %v1715_v4 }
 0x436   : > { %1722 = vmax.xlane.f32.xlu1 %v1721_v5 }
 0x48e   : > { %v1687_v7 = vpop.xlane.xlu1 %1686 }
 0x48f   : > { %v1729_v8 = vsub.f32 %v3748_v17, %v1687_v7 }
 0x491   : > { %v1747_v9 = vmul.f32 1.442695, %v1729_v8  ;;  %v1684_v10 = vpop.xlane.xlu0 %1683 }
 0x492   : > { %v1681_v11 = vpop.xlane.xlu1 %1680  ;;  %v1728_v13 = vsub.f32 %v3760_v25, %v1684_v10 }
 0x493   : > { %3347 = vpow2.f32 %v1747_v9  ;;  %v1727_v12 = vsub.f32 %v3753_v21, %v1681_v11 }
 0x494   : > { %v1745_v18 = vmul.f32 1.442695, %v1728_v13 }
 0x495   : > { %v1743_v14 = vmul.f32 1.442695, %v1727_v12 }
 0x496   : > { %v1690_v15 = vpop.xlane.xlu1 %1689 }
 0x497   : > { %3349 = vpow2.f32 %v1743_v14  ;;  %v1730_v16 = vsub.f32 %v3764_v27, %v1690_v15 }
 0x499   : > { %v1749_v19 = vmul.f32 1.442695, %v1730_v16 }
 0x49b   : > { %3351 = vpow2.f32 %v1749_v19 }
 0x49c   : > { %3353 = vpow2.f32 %v1745_v18 }
 0x49d   : > { %v3825_v20 = vpop.eup %3347 }
 0x49e   : > { %v1781_v17 = vsel %vm934_vm1, %v3825_v20, 0.0 }
 0x49f   : > { %1782 = vadd.xlane.f32.xlu1 %v1781_v17 }
 0x4a1   : > { %v3829_v22 = vpop.eup %3349 }
 0x4a2   : > { %v1775_v21 = vsel %vm934_vm1, %v3829_v22, 0.0 }
 0x4a3   : > { %1776 = vadd.xlane.f32.xlu1 %v1775_v21 }
 0x4a5   : > { %v3833_v23 = vpop.eup %3351 }
 0x4a6   : > { %v1784_v24 = vsel %vm934_vm1, %v3833_v23, 0.0  ;;  %v3837_v26 = vpop.eup %3353 }
 0x4a7   : > { %v1705_v25 = vpop.xlane.xlu1 %1704  ;;  %1785 = vadd.xlane.f32.xlu0 %v1784_v24  ;;  %v1778_v28 = vsel %vm934_vm1, %v3837_v26, 0.0 }
 0x4a8   : > { %v1735_v48 = vsub.f32 %v3770_v36, %v1705_v25 }
 0x4a9   : > { %v1708_v27 = vpop.xlane.xlu0 %1707 }
 0x4aa   : > { %v1736_v30 = vsub.f32 %v3775_v40, %v1708_v27  ;;  %v1759_v58 = vmul.f32 1.442695, %v1735_v48 }
 0x4ab   : > { %v1699_v29 = vpop.xlane.xlu1 %1698  ;;  %1779 = vadd.xlane.f32.xlu0 %v1778_v28 }
 0x4ac   : > { %v1761_v34 = vmul.f32 1.442695, %v1736_v30 }
 0x4ad   : > { %v1714_v31 = vpop.xlane.xlu0 %1713 }
 0x4ae   : > { %v1738_v32 = vsub.f32 %v3779_v42, %v1714_v31 }
 0x4af   : > { %v1693_v33 = vpop.xlane.xlu1 %1692 }
 0x4b0   : > { %v1765_v35 = vmul.f32 1.442695, %v1738_v32  ;;  %v1731_v5 = vsub.f32 %v3783_v44, %v1693_v33  ;;  %v3281_v32 = vpack.i.bf16 %v3713_v6, %v3711_v0 }
 0x4b1   : > { %v1720_v37 = vpop.xlane.xlu0 %1719 }
 0x4b2   : > { %3355 = vpow2.f32 %v1765_v35  ;;  %v1740_v55 = vsub.f32 %v3793_v53, %v1720_v37  ;;  %v1751_v9 = vmul.f32 1.442695, %v1731_v5 }
 0x4b3   : > { %v1702_v38 = vpop.xlane.xlu1 %1701  ;;  %3357 = vpow2.f32 %v1761_v34 }
 0x4b4   : > { %v1734_v41 = vsub.f32 %v3789_v50, %v1702_v38  ;;  %v1769_v2 = vmul.f32 1.442695, %v1740_v55 }
 0x4b5   : > { %v1726_v45 = vpop.xlane.xlu0 %1725 }
 0x4b6   : > { %v1757_v43 = vmul.f32 1.442695, %v1734_v41  ;;  %v1742_v46 = vsub.f32 %v3795_v54, %v1726_v45 }
 0x4b7   : > { %v1696_v47 = vpop.xlane.xlu1 %1695 }
 0x4b8   : > { %3359 = vpow2.f32 %v1757_v43  ;;  %v1732_v40 = vsub.f32 %v3799_v56, %v1696_v47  ;;  %v1773_v49 = vmul.f32 1.442695, %v1742_v46  ;;  %v1733_v56 = vsub.f32 %v3773_v39, %v1699_v29 }
 0x4ba   : > { %v1753_v42 = vmul.f32 1.442695, %v1732_v40 }
 0x4bb   : > { %v1711_v51 = vpop.xlane.xlu1 %1710 }
 0x4bc   : > { %v3847_v52 = vpop.eup %3355  ;;  %3361 = vpow2.f32 %v1753_v42  ;;  %v1737_v50 = vsub.f32 %v3806_v62, %v1711_v51  ;;  %v1755_v62 = vmul.f32 1.442695, %v1733_v56 }
 0x4bd   : > { %v1808_v57 = vsel %vm934_vm1, %v3847_v52, 0.0  ;;  %v3853_v54 = vpop.eup %3357  ;;  %3363 = vpow2.f32 %v1773_v49 }
 0x4be   : > { %v1763_v63 = vmul.f32 1.442695, %v1737_v50  ;;  %1809 = vadd.xlane.f32.xlu0 %v1808_v57  ;;  %v1802_v53 = vsel %vm934_vm1, %v3853_v54, 0.0 }
 0x4bf   : > { %v1717_v36 = vpop.xlane.xlu1 %1716 }
 0x4c0   : > { %3365 = vpow2.f32 %v1763_v63  ;;  %v1739_v44 = vsub.f32 %v3810_v1, %v1717_v36 }
 0x4c1   : > { %3367 = vpow2.f32 %v1759_v58 }
 0x4c2   : > { %v3858_v4 = vpop.eup %3359  ;;  %1803 = vadd.xlane.f32.xlu0 %v1802_v53  ;;  %3369 = vpow2.f32 %v1769_v2  ;;  %v1767_v19 = vmul.f32 1.442695, %v1739_v44 }
 0x4c3   : > { %v1723_v7 = vpop.xlane.xlu1 %1722  ;;  %v1796_v39 = vsel %vm934_vm1, %v3858_v4, 0.0  ;;  %3371 = vpow2.f32 %v1755_v62 }
 0x4c4   : > { %v1741_v10 = vsub.f32 %v3815_v3, %v1723_v7  ;;  %3373 = vpow2.f32 %v1751_v9 }
 0x4c6   : > { %v3863_v8 = vpop.eup %3361  ;;  %1797 = vadd.xlane.f32.xlu0 %v1796_v39  ;;  %v1771_v14 = vmul.f32 1.442695, %v1741_v10 }
 0x4c7   : > { %v3866_v11 = vpop.eup %3363  ;;  %v1790_v12 = vsel %vm934_vm1, %v3863_v8, 0.0 }
 0x4c8   : > { %v1820_v3 = vsel %vm934_vm1, %v3866_v11, 0.0  ;;  %3375 = vpow2.f32 %v1771_v14 }
 0x4c9   : > { %3377 = vpow2.f32 %v1767_v19 }
 0x4ca   : > { %v3870_v13 = vpop.eup %3365  ;;  %1791 = vadd.xlane.f32.xlu0 %v1790_v12 }
 0x4cb   : > { %v1805_v15 = vsel %vm934_vm1, %v3870_v13, 0.0  ;;  %v3875_v16 = vpop.eup %3367 }
 0x4cc   : > { %1806 = vadd.xlane.f32.xlu1 %v1805_v15  ;;  %v3879_v18 = vpop.eup %3369  ;;  %v1799_v17 = vsel %vm934_vm1, %v3875_v16, 0.0 }
 0x4cd   : > { %v3883_v1 = vpop.eup %3371  ;;  %v1814_v21 = vsel %vm934_vm1, %v3879_v18, 0.0 }
 0x4ce   : > { %1821 = vadd.xlane.f32.xlu0 %v1820_v3  ;;  %v1793_v24 = vsel %vm934_vm1, %v3883_v1, 0.0  ;;  %v3374_v25 = vpop.eup %3373 }
 0x4cf   : > { %v1787_v27 = vsel %vm934_vm1, %v3374_v25, 0.0 }
 0x4d0   : > { %1800 = vadd.xlane.f32.xlu1 %v1799_v17 }
 0x4d2   : > { %1815 = vadd.xlane.f32.xlu0 %v1814_v21  ;;  %v3890_v28 = vpop.eup %3375 }
 0x4d3   : > { %v1817_v29 = vsel %vm934_vm1, %v3890_v28, 0.0  ;;  %v3894_v30 = vpop.eup %3377 }
 0x4d4   : > { %1794 = vadd.xlane.f32.xlu1 %v1793_v24  ;;  %v1811_v31 = vsel %vm934_vm1, %v3894_v30, 0.0 }
 0x4d8   : > { %1788 = vadd.xlane.f32.xlu1 %v1787_v27 }
 0x4dc   : > { %1818 = vadd.xlane.f32.xlu1 %v1817_v29 }
 0x4e0   : > { %1812 = vadd.xlane.f32.xlu1 %v1811_v31 }
 0x4ff   : > { %3282 = vxpose.xlu0.b32.start.end [1/1] (short) (narrow) %v3281_v32, 32 }
 0x513   : > { %3260 = vxpose.xlu1.b32.start.end [1/1] (short) (narrow) %v3259_v61, 32 }
 0x52c   : > { %v1783_v33 = vpop.xlane.xlu1 %1782 }
 0x52d   : > { %3379 = vrcp.f32 %v1783_v33 }
 0x530   : > { %v1777_v34 = vpop.xlane.xlu1 %1776 }
 0x534   : > { %v1786_v35 = vpop.xlane.xlu0 %1785 }
 0x535   : > { %3381 = vrcp.f32 %v1786_v35 }
 0x536   : > { %3383 = vrcp.f32 %v1777_v34 }
 0x537   : > { %v3380_v38 = vpop.eup %3379 }
 0x538   : > { %v1780_v37 = vpop.xlane.xlu0 %1779  ;;  %v3904_v43 = vmul.f32 %v3380_v38, %v3825_v20 }
 0x539   : > { %3385 = vrcp.f32 %v1780_v37 }
 0x53f   : > { %v3382_v41 = vpop.eup %3381 }
 0x540   : > { %v3907_v0 = vmul.f32 %v3382_v41, %v3833_v23  ;;  %v3384_v6 = vpop.eup %3383 }
 0x541   : > { %v1839_v61 = vmul.f32 %v3384_v6, %v3829_v22 }
 0x542   : > { %v1856_v59 = vpack.c.bf16 %v3907_v0, %v3904_v43 }
 0x543   : > { %v3386_v60 = vpop.eup %3385 }
 0x544   : > { %v1840_v45 = vmul.f32 %v3386_v60, %v3837_v26 }
 0x546   : > { %v1855_v46 = vpack.c.bf16 %v1840_v45, %v1839_v61 }
 0x548   : > { %3063 = vmatprep.mubr.msk.bf16.mxu1 %vm934_vm1, %v1855_v46 }
 0x54b   : > { %v1810_v47 = vpop.xlane.xlu0 %1809 }
 0x54c   : > { %3387 = vrcp.f32 %v1810_v47 }
 0x54f   : > { %v1804_v40 = vpop.xlane.xlu0 %1803 }
 0x553   : > { %v1798_v48 = vpop.xlane.xlu0 %1797 }
 0x556   : > { %v3388_v51 = vpop.eup %3387 }
 0x557   : > { %v1792_v42 = vpop.xlane.xlu0 %1791  ;;  %v3915_v50 = vmul.f32 %v3388_v51, %v3847_v52 }
 0x559   : > { %v1807_v20 = vpop.xlane.xlu1 %1806 }
 0x55a   : > { %3389 = vrcp.f32 %v1807_v20 }
 0x55b   : > { %3391 = vrcp.f32 %v1792_v42  ;;  %v1822_v53 = vpop.xlane.xlu0 %1821 }
 0x55d   : > { %v1801_v23 = vpop.xlane.xlu1 %1800 }
 0x55f   : > { %v1816_v62 = vpop.xlane.xlu0 %1815 }
 0x561   : > { %v1795_v49 = vpop.xlane.xlu1 %1794 }
 0x564   : > { %v3390_v55 = vpop.eup %3389 }
 0x565   : > { %v3918_v22 = vmul.f32 %v3390_v55, %v3870_v13  ;;  %v1789_v26 = vpop.xlane.xlu1 %1788  ;;  %v3392_v58 = vpop.eup %3391 }
 0x566   : > { %3393 = vrcp.f32 %v1789_v26  ;;  %v1844_v36 = vmul.f32 %v3392_v58, %v3863_v8 }
 0x567   : > { %v1860_v57 = vpack.c.bf16 %v3915_v50, %v3918_v22  ;;  %3395 = vrcp.f32 %v1804_v40  ;;  %v3335_v22 = vld [vmem:[%s4157_s24] sm:$0xff]  }
 0x568   : > { %3397 = vrcp.f32 %v1798_v48 }
 0x569   : > { %v1819_v39 = vpop.xlane.xlu1 %1818  ;;  %3399 = vrcp.f32 %v1795_v49 }
 0x56a   : > { %3401 = vrcp.f32 %v1801_v23 }
 0x56d   : > { %v1813_v10 = vpop.xlane.xlu1 %1812 }
 0x56e   : > { %3403 = vrcp.f32 %v1813_v10 }
 0x56f   : > { %3405 = vrcp.f32 %v1816_v62 }
 0x570   : > { %v3394_v56 = vpop.eup %3393  ;;  %3407 = vrcp.f32 %v1822_v53 }
 0x571   : > { %v1843_v63 = vmul.f32 %v3394_v56, %v3374_v25  ;;  %v3396_v21 = vpop.eup %3395  ;;  %3409 = vrcp.f32 %v1819_v39 }
 0x572   : > { %v3398_v24 = vpop.eup %3397  ;;  %v1848_v20 = vmul.f32 %v3396_v21, %v3853_v54 }
 0x573   : > { %v1857_v2 = vpack.c.bf16 %v1844_v36, %v1843_v63  ;;  %v3400_v29 = vpop.eup %3399  ;;  %v1846_v47 = vmul.f32 %v3398_v24, %v3858_v4 }
 0x574   : > { %v3402_v37 = vpop.eup %3401  ;;  %v1845_v60 = vmul.f32 %v3400_v29, %v3883_v1 }
 0x575   : > { %3071 = vmatprep.mubr.msk.bf16.mxu0 %vm934_vm1, %v1857_v2  ;;  %v1847_v40 = vmul.f32 %v3402_v37, %v3875_v16 }
 0x576   : > { %v1858_v4 = vpack.c.bf16 %v1846_v47, %v1845_v60 }
 0x577   : > { %v1859_v26 = vpack.c.bf16 %v1848_v20, %v1847_v40 }
 0x578   : > { %v3404_v6 = vpop.eup %3403 }
 0x579   : > { %v3406_v46 = vpop.eup %3405  ;;  %v1851_v42 = vmul.f32 %v3404_v6, %v3894_v30 }
 0x57a   : > { %v1852_v54 = vmul.f32 %v3406_v46, %v3879_v18  ;;  %v3408_v16 = vpop.eup %3407 }
 0x57b   : > { %v3410_v58 = vpop.eup %3409  ;;  %v1854_v36 = vmul.f32 %v3408_v16, %v3866_v11 }
 0x57c   : > { %v1861_v30 = vpack.c.bf16 %v1852_v54, %v1851_v42  ;;  %v1853_v18 = vmul.f32 %v3410_v58, %v3890_v28 }
 0x57e   : > { %v1862_v43 = vpack.c.bf16 %v1854_v36, %v1853_v18  ;;  %v3427_v36 = vld [vmem:[#allocation2 + $0x10] sm:$0xff] }
 0x57f   : > { %v3283_v52 = vpop.trf.xlu0 }
 0x580   : > { %v3287_v25 = vunpack.i.h.bf16 %v3283_v52  ;;  %v3284_v27 = vunpack.i.l.bf16 %v3283_v52 }
 0x583   : > { %v3288_v5 = vpop.trf.xlu0 }
 0x584   : > { %v3292_v31 = vunpack.i.h.bf16 %v3288_v5  ;;  %v3289_v32 = vunpack.i.l.bf16 %v3288_v5 }
 0x586   : > { %v1426_v48 = vpack.c.bf16 %v3289_v32, %v3284_v27  ;;  %v1428_v23 = vpack.c.bf16 %v3292_v31, %v3287_v25 }
 0x587   : > { %v3924_v7 = vpop.trf.xlu0 }
 0x588   : > { %v3297_v49 = vunpack.i.h.bf16 %v3924_v7  ;;  %v3294_v51 = vunpack.i.l.bf16 %v3924_v7 }
 0x58b   : > { %v3926_v9 = vpop.trf.xlu0 }
 0x58c   : > { %v3302_v1 = vunpack.i.h.bf16 %v3926_v9  ;;  %v3299_v55 = vunpack.i.l.bf16 %v3926_v9 }
 0x58e   : > { %v1427_v56 = vpack.c.bf16 %v3299_v55, %v3294_v51  ;;  %v1429_v63 = vpack.c.bf16 %v3302_v1, %v3297_v49 }
 0x593   : > { %v3261_v12 = vpop.trf.xlu1 }
 0x594   : > { %v3265_v8 = vunpack.i.h.bf16 %v3261_v12  ;;  %v3262_v13 = vunpack.i.l.bf16 %v3261_v12 }
 0x597   : > { %v3266_v44 = vpop.trf.xlu1 }
 0x598   : > { %v3270_v14 = vunpack.i.h.bf16 %v3266_v44  ;;  %v3267_v15 = vunpack.i.l.bf16 %v3266_v44 }
 0x59a   : > { %v1422_v3 = vpack.c.bf16 %v3267_v15, %v3262_v13  ;;  %v1424_v19 = vpack.c.bf16 %v3270_v14, %v3265_v8 }
 0x59b   : > { %v3271_v17 = vpop.trf.xlu1 }
 0x59c   : > { %3059 = vmatprep.subr.bf16.mxu1 %v1422_v3  ;;  %3067 = vmatprep.subr.bf16.mxu0 %v1424_v19  ;;  %v3275_v33 = vunpack.i.h.bf16 %v3271_v17  ;;  %v3272_v34 = vunpack.i.l.bf16 %v3271_v17 }
 0x59d   : > { %3060 = vmatpush3.bf16.msra.mxu1 %v1422_v3  ;;  %3068 = vmatpush3.bf16.msra.mxu0 %v1424_v19  ;;  %v3336_v3 = vld [vmem:[%s4157_s24 + $0x8] sm:$0xff]  }
 0x59f   : > { %v3276_v35 = vpop.trf.xlu1 }
 0x5a0   : > { %v3280_v38 = vunpack.i.h.bf16 %v3276_v35  ;;  %v3277_v41 = vunpack.i.l.bf16 %v3276_v35 }
 0x5a2   : > { %v1423_v61 = vpack.c.bf16 %v3277_v41, %v3272_v34  ;;  %v1425_v45 = vpack.c.bf16 %v3280_v38, %v3275_v33 }
 0x5a4   : > { %3061 = vmatprep.subr.bf16.mxu1 %v1423_v61  ;;  %3069 = vmatprep.subr.bf16.mxu0 %v1425_v45 }
 0x5a5   : > { %3062 = vmatpush3.bf16.msra.mxu1 %v1423_v61  ;;  %3070 = vmatpush3.bf16.msra.mxu0 %v1425_v45 }
 0x5a6   : > { %3075 = vmatprep.subr.bf16.mxu1 %v1426_v48  ;;  %3083 = vmatprep.subr.bf16.mxu0 %v1428_v23 }
 0x5a8   : > { %3064 = vmatmul.mubr.msk.bf16.vlgmr.msra.gmra.mrb[4].mxu1 %vm934_vm1, %v1856_v59  ;;  %3072 = vmatmul.mubr.msk.bf16.vlgmr.msra.gmra.mrb[16].mxu0 %vm934_vm1, %v1858_v4 }
 0x5a9   : > { %3076 = vmatpush3.bf16.msra.mxu1 %v1426_v48  ;;  %3079 = vmatprep.mubr.msk.bf16.mxu1 %vm934_vm1, %v1859_v26  ;;  %v2894_v26 = vld [vmem:[%s4158_s18] ss:$0 sm:$0xff] }
 0x5aa   : > { %3084 = vmatpush3.bf16.msra.mxu0 %v1428_v23  ;;  %3087 = vmatprep.mubr.msk.bf16.mxu0 %vm934_vm1, %v1861_v30 }
 0x5ab   : > { %3077 = vmatprep.subr.bf16.mxu1 %v1427_v56  ;;  %3085 = vmatprep.subr.bf16.mxu0 %v1429_v63 }
 0x5ad   : > { %3078 = vmatpush3.bf16.msra.mxu1 %v1427_v56 }
 0x5ae   : > { %3086 = vmatpush3.bf16.msra.mxu0 %v1429_v63  ;;  %3091 = vmatprep.subr.bf16.mxu1 %v3335_v22 }
 0x5b0   : > { %3080 = vmatmul.mubr.msk.bf16.vlgmr.msra.gmra.mrb[8].mxu1 %vm934_vm1, %v1860_v57 }
 0x5b1   : > { %3088 = vmatmul.mubr.msk.bf16.vlgmr.msra.gmra.mrb[20].mxu0 %vm934_vm1, %v1862_v43  ;;  %3092 = vmatpush3.bf16.msra.mxu1 %v3335_v22 }
 0x5b2   : > { %3093 = vmatprep.subr.bf16.mxu1 %v3336_v3 }
 0x5b5   : > { %3094 = vmatpush3.bf16.msra.mxu1 %v3336_v3  ;;  %v3338_v3 = vld [vmem:[%s3620_s5 + $0x8] sm:$0xff]  }
 0x67b   : > { %v3065_v0 = vpop.f32.mrb[4].mxu1  ;;  %v3073_v59 = vpop.f32.mrb[16].mxu0 }
 0x67c   : > { %v1903_v2 = vpop.f32.mrb[5].mxu1  ;;  %v1958_v53 = vpop.f32.mrb[17].mxu0 }
 0x67d   : > { %v3066_v28 = vpop.f32.mrb[6].mxu1  ;;  %v3074_v62 = vpop.f32.mrb[18].mxu0 }
 0x67e   : > { %v3313_v52 = vpack.i.bf16 %v3074_v62, %v3073_v59  ;;  %v1906_v5 = vpop.f32.mrb[7].mxu1  ;;  %v1961_v11 = vpop.f32.mrb[19].mxu0  ;;  %v3428_v59 = vld [vmem:[#allocation2] sm:$0xff] }
 0x67f   : > { %v3318_v7 = vpack.i.bf16 %v1961_v11, %v1958_v53 }
 0x681   : > { %3319 = vrot.lane.b32.xlu0 %v3318_v7, %s3471_s26 }
 0x683   : > { %v3081_v50 = vpop.f32.mrb[8].mxu1 }
 0x684   : > { %v3089_v39 = vpop.f32.mrb[20].mxu0  ;;  %v2013_v57 = vpop.f32.mrb[9].mxu1 }
 0x685   : > { %v2068_v9 = vpop.f32.mrb[21].mxu0  ;;  %v3082_v10 = vpop.f32.mrb[10].mxu1 }
 0x686   : > { %v3303_v12 = vpack.i.bf16 %v3082_v10, %v3081_v50  ;;  %v3090_v8 = vpop.f32.mrb[22].mxu0  ;;  %v2016_v13 = vpop.f32.mrb[11].mxu1  ;;  %v3430_v50 = vld [vmem:[#allocation2 + $0x18] sm:$0xff] }
 0x687   : > { %v3328_v44 = vpack.i.bf16 %v3090_v8, %v3089_v39  ;;  %v3308_v14 = vpack.i.bf16 %v2016_v13, %v2013_v57  ;;  %v2071_v15 = vpop.f32.mrb[23].mxu0 }
 0x688   : > { %v3323_v19 = vpack.i.bf16 %v2071_v15, %v2068_v9  ;;  %3304 = vrot.lane.b32.xlu1 %v3303_v12, %s3472_s25  ;;  %v3337_v15 = vld [vmem:[%s3620_s5] sm:$0xff]  }
 0x689   : > { %3099 = vmatprep.subr.bf16.mxu0 %v3337_v15 }
 0x68a   : > { %3324 = vrot.lane.b32.xlu0 %v3323_v19, %s3473_s27  ;;  %3100 = vmatpush3.bf16.msra.mxu0 %v3337_v15  ;;  %v3339_v19 = vld [vmem:[%s3630_s0] sm:$0xff]  }
 0x68b   : > { %3101 = vmatprep.subr.bf16.mxu0 %v3338_v3  ;;  %3107 = vmatprep.subr.bf16.mxu1 %v3339_v19 }
 0x68c   : > { %3309 = vrot.lane.b32.xlu1 %v3308_v14, %s3472_s25  ;;  %s4160_s25 = scalar_lea.vmem %s4122_s10, %s3588_s20 }
 0x68e   : > { %3102 = vmatpush3.bf16.msra.mxu0 %v3338_v3 }
 0x690   : > { %3314 = vrot.lane.b32.xlu1 %v3313_v52, %s3471_s26  ;;  %v3429_v52 = vld [vmem:[#allocation2 + $0x8] sm:$0xff] }
 0x694   : > { %3329 = vrot.lane.b32.xlu1 %v3328_v44, %s3473_s27 }
 0x6f3   : > { %v3320_v17 = vpop.permute.xlu0 %3319 }
 0x6f4   : > { %v3322_v24 = vunpack.i.h.bf16 %v3320_v17  ;;  %v3321_v25 = vunpack.i.l.bf16 %v3320_v17  ;;  %v3340_v17 = vld [vmem:[%s3630_s0 + $0x8] sm:$0xff]  }
 0x6f6   : > { %v2131_v33 = vsel %vm1434_vm2, %v1903_v2, %v3321_v25  ;;  %v2132_v34 = vsel %vm1434_vm2, %v1906_v5, %v3322_v24  ;;  %v3342_v24 = vld [vmem:[%s3630_s0 + $0x18] sm:$0xff]   ;;  %v3343_v25 = vld [vmem:[%s3630_s0 + $0x20] sm:$0xff]  }
 0x6fa   : > { %v3305_v21 = vpop.permute.xlu1 %3304 }
 0x6fb   : > { %v3307_v48 = vunpack.i.h.bf16 %v3305_v21  ;;  %v3306_v23 = vunpack.i.l.bf16 %v3305_v21  ;;  %v3341_v21 = vld [vmem:[%s3630_s0 + $0x10] sm:$0xff]  }
 0x6fc   : > { %v3325_v27 = vpop.permute.xlu0 %3324 }
 0x6fd   : > { %v3327_v35 = vunpack.i.h.bf16 %v3325_v27  ;;  %v3326_v37 = vunpack.i.l.bf16 %v3325_v27  ;;  %v3344_v27 = vld [vmem:[%s3630_s0 + $0x28] sm:$0xff]  }
 0x6fe   : > { %v3310_v29 = vpop.permute.xlu1 %3309 }
 0x6ff   : > { %v3312_v31 = vunpack.i.h.bf16 %v3310_v29  ;;  %v3311_v32 = vunpack.i.l.bf16 %v3310_v29 }
 0x701   : > { %v2137_v38 = vsel %vm2135_vm3, %v2132_v34, %v3312_v31  ;;  %v2136_v41 = vsel %vm2135_vm3, %v2131_v33, %v3311_v32 }
 0x702   : > { %v3315_v6 = vpop.permute.xlu1 %3314  ;;  %v2141_v60 = vsel %vm2140_vm4, %v2136_v41, %v3326_v37  ;;  %v2142_v61 = vsel %vm2140_vm4, %v2137_v38, %v3327_v35 }
 0x703   : > { %v3317_v45 = vunpack.i.h.bf16 %v3315_v6  ;;  %v3316_v46 = vunpack.i.l.bf16 %v3315_v6  ;;  %v2145_v47 = vpack.c.bf16 %v2142_v61, %v2141_v60 }
 0x705   : > { %v2134_v40 = vsel %vm1434_vm2, %v3066_v28, %v3317_v45  ;;  %v2133_v20 = vsel %vm1434_vm2, %v3065_v0, %v3316_v46  ;;  %3095 = vmatprep.mubr.msk.bf16.mxu1 %vm934_vm1, %v2145_v47 }
 0x706   : > { %v3330_v42 = vpop.permute.xlu1 %3329  ;;  %v2138_v1 = vsel %vm2135_vm3, %v2133_v20, %v3306_v23  ;;  %v2139_v55 = vsel %vm2135_vm3, %v2134_v40, %v3307_v48 }
 0x707   : > { %v3332_v49 = vunpack.i.h.bf16 %v3330_v42  ;;  %v3331_v51 = vunpack.i.l.bf16 %v3330_v42 }
 0x709   : > { %v2143_v4 = vsel %vm2140_vm4, %v2138_v1, %v3331_v51  ;;  %v2144_v54 = vsel %vm2140_vm4, %v2139_v55, %v3332_v49 }
 0x70a   : > { %v2146_v16 = vpack.c.bf16 %v2144_v54, %v2143_v4 }
 0x70c   : > { %3096 = vmatmul.mubr.msk.bf16.vlgmr.msra.gmra.mrb[12].mxu1 %vm934_vm1, %v2146_v16 }
 0x70d   : > { %3108 = vmatpush3.bf16.msra.mxu1 %v3339_v19 }
 0x70e   : > { %3109 = vmatprep.subr.bf16.mxu1 %v3340_v17 }
 0x711   : > { %3110 = vmatpush3.bf16.msra.mxu1 %v3340_v17 }
 0x712   : > { %3111 = vmatprep.subr.bf16.mxu1 %v3341_v21 }
 0x715   : > { %3112 = vmatpush3.bf16.msra.mxu1 %v3341_v21 }
 0x716   : > { %3113 = vmatprep.subr.bf16.mxu1 %v3342_v24 }
 0x719   : > { %3114 = vmatpush3.bf16.msra.mxu1 %v3342_v24 }
 0x71a   : > { %3115 = vmatprep.subr.bf16.mxu1 %v3343_v25 }
 0x71d   : > { %3116 = vmatpush3.bf16.msra.mxu1 %v3343_v25 }
 0x71e   : > { %3117 = vmatprep.subr.bf16.mxu1 %v3344_v27 }
 0x721   : > { %3118 = vmatpush3.bf16.msra.mxu1 %v3344_v27 }
 0x7df   : > { %v3097_v58 = vpop.f32.mrb[12].mxu1 }
 0x7e0   : > { %v2219_v30 = vadd.f32 %v3097_v58, %v2894_v26  ;;  %v2210_v56 = vpop.f32.mrb[13].mxu1 }
 0x7e1   : > { %v2211_v63 = vadd.f32 %v2894_v26, %v2210_v56  ;;  %v3098_v18 = vpop.f32.mrb[14].mxu1 }
 0x7e2   : > { %v3975_v43 = vadd.f32 %v3427_v36, %v2219_v30  ;;  %v2213_v0 = vpop.f32.mrb[15].mxu1  ;;  %v2222_v28 = vadd.f32 %v3098_v18, %v2894_v26 }
 0x7e3   : > { %v3977_v2 = vadd.f32 %v3428_v59, %v2211_v63  ;;  %v2214_v53 = vadd.f32 %v2894_v26, %v2213_v0  ;;  %v2899_v63 = vld [vmem:[%s4159_s22] ss:$0 sm:$0xff]  ;;  %s4162_s22 = sld [smem:[#allocation14_spill]] (!%p2917_p5) }
 0x7e4   : > { %v2237_v62 = vsel %vm934_vm1, %v3975_v43, 0.0  ;;  %v3987_v22 = vadd.f32 %v3430_v50, %v2222_v28  ;;  %v2249_v9 = vmul.f32 %v3975_v43, %v3975_v43 }
 0x7e5   : > { %v3981_v5 = vadd.f32 %v3429_v52, %v2214_v53  ;;  %2238 = vadd.xlane.f32.xlu0 %v2237_v62  ;;  %v2247_v7 = vmul.f32 %v3977_v2, %v3977_v2  ;;  %v2231_v39 = vsel %vm934_vm1, %v3977_v2, 0.0 }
 0x7e6   : > { %v2240_v10 = vsel %vm934_vm1, %v3987_v22, 0.0  ;;  %v2257_v8 = vsel %vm934_vm1, %v2249_v9, 0.0  ;;  %v2250_v44 = vmul.f32 %v3987_v22, %v3987_v22 }
 0x7e7   : > { %v2234_v11 = vsel %vm934_vm1, %v3981_v5, 0.0  ;;  %v2251_v57 = vsel %vm934_vm1, %v2247_v7, 0.0  ;;  %v2248_v12 = vmul.f32 %v3981_v5, %v3981_v5 }
 0x7e8   : > { %2235 = vadd.xlane.f32.xlu1 %v2234_v11  ;;  %v2260_v14 = vsel %vm934_vm1, %v2250_v44, 0.0  ;;  %v2901_v44 = vld [vmem:[%s746_s7] ss:$0 sm:$0xff] }
 0x7e9   : > { %2232 = vadd.xlane.f32.xlu0 %v2231_v39  ;;  %v2254_v13 = vsel %vm934_vm1, %v2248_v12, 0.0 }
 0x7ec   : > { %2252 = vadd.xlane.f32.xlu1 %v2251_v57 }
 0x7ed   : > { %2241 = vadd.xlane.f32.xlu0 %v2240_v10 }
 0x7f0   : > { %2258 = vadd.xlane.f32.xlu1 %v2257_v8 }
 0x7f1   : > { %2255 = vadd.xlane.f32.xlu0 %v2254_v13  ;;  %v3345_v13 = vld [vmem:[%s3630_s0 + $0x30] sm:$0xff]  }
 0x7f2   : > { %3119 = vmatprep.subr.bf16.mxu1 %v3345_v13 }
 0x7f3   : > { %3120 = vmatpush3.bf16.msra.mxu1 %v3345_v13 }
 0x7f5   : > { %2261 = vadd.xlane.f32.xlu0 %v2260_v14 }
 0x872   : > { %v2239_v29 = vpop.xlane.xlu0 %2238 }
 0x873   : > { %v2245_v37 = vmul.f32 0.03125, %v2239_v29 }
 0x875   : > { %v2236_v31 = vpop.xlane.xlu1 %2235  ;;  %v2269_v45 = vmul.f32 %v2245_v37, %v2245_v37  ;;  %v2277_v36 = vsub.f32 %v3975_v43, %v2245_v37 }
 0x876   : > { %v2233_v32 = vpop.xlane.xlu0 %2232  ;;  %v2244_v6 = vmul.f32 0.03125, %v2236_v31 }
 0x877   : > { %v2243_v33 = vmul.f32 0.03125, %v2233_v32 }
 0x878   : > { %v2268_v20 = vmul.f32 %v2244_v6, %v2244_v6  ;;  %v2276_v0 = vsub.f32 %v3981_v5, %v2244_v6 }
 0x879   : > { %v2267_v34 = vmul.f32 %v2243_v33, %v2243_v33  ;;  %v2253_v35 = vpop.xlane.xlu1 %2252  ;;  %v2275_v30 = vsub.f32 %v3977_v2, %v2243_v33  ;;  %v2900_v2 = vld [vmem:[%s4160_s25] ss:$0 sm:$0xff] }
 0x87a   : > { %v2263_v38 = vmul.f32 0.03125, %v2253_v35  ;;  %v2242_v41 = vpop.xlane.xlu0 %2241  ;;  %v2906_v35 = vld [vmem:[%s754_s1] ss:$0 sm:$0xff] }
 0x87b   : > { %v2246_v48 = vmul.f32 0.03125, %v2242_v41 }
 0x87c   : > { %v2271_v60 = vsub.f32 %v2263_v38, %v2267_v34 }
 0x87d   : > { %v2259_v61 = vpop.xlane.xlu1 %2258  ;;  %v2270_v55 = vmul.f32 %v2246_v48, %v2246_v48  ;;  %v2278_v52 = vsub.f32 %v3987_v22, %v2246_v48  ;;  %v3346_v22 = vld [vmem:[%s3630_s0 + $0x38] sm:$0xff]  }
 0x87e   : > { %v2279_v46 = vadd.f32 1e-05, %v2271_v60  ;;  %v2265_v47 = vmul.f32 0.03125, %v2259_v61  ;;  %v2256_v40 = vpop.xlane.xlu0 %2255  ;;  %3121 = vmatprep.subr.bf16.mxu1 %v3346_v22 }
 0x87f   : > { %v2264_v23 = vmul.f32 0.03125, %v2256_v40  ;;  %3122 = vmatpush3.bf16.msra.mxu1 %v3346_v22 }
 0x880   : > { %3411 = vrsqrt.f32 %v2279_v46  ;;  %v2273_v42 = vsub.f32 %v2265_v47, %v2269_v45 }
 0x881   : > { %v2272_v49 = vsub.f32 %v2264_v23, %v2268_v20 }
 0x882   : > { %v2281_v51 = vadd.f32 1e-05, %v2273_v42  ;;  %v2262_v1 = vpop.xlane.xlu0 %2261 }
 0x883   : > { %v2280_v4 = vadd.f32 1e-05, %v2272_v49  ;;  %v2266_v54 = vmul.f32 0.03125, %v2262_v1 }
 0x884   : > { %3413 = vrsqrt.f32 %v2281_v51 }
 0x885   : > { %3415 = vrsqrt.f32 %v2280_v4  ;;  %v2274_v16 = vsub.f32 %v2266_v54, %v2270_v55 }
 0x887   : > { %v2282_v26 = vadd.f32 1e-05, %v2274_v16 }
 0x889   : > { %3417 = vrsqrt.f32 %v2282_v26 }
 0x88a   : > { %v3412_v58 = vpop.eup %3411 }
 0x88b   : > { %v2287_v56 = vmul.f32 %v3412_v58, %v2275_v30 }
 0x88d   : > { %v2297_v62 = vmul.f32 %v2899_v63, %v2287_v56 }
 0x88e   : > { %v3414_v18 = vpop.eup %3413 }
 0x88f   : > { %v3416_v59 = vpop.eup %3415  ;;  %v2289_v53 = vmul.f32 %v3414_v18, %v2277_v36  ;;  %v2307_v39 = vadd.f32 %v2900_v2, %v2297_v62 }
 0x890   : > { %v2288_v28 = vmul.f32 %v3416_v59, %v2276_v0 }
 0x891   : > { %v2299_v5 = vmul.f32 %v2899_v63, %v2289_v53 }
 0x892   : > { %v2298_v11 = vmul.f32 %v2899_v63, %v2288_v28 }
 0x893   : > { %v3418_v7 = vpop.eup %3417  ;;  %v2309_v10 = vadd.f32 %v2900_v2, %v2299_v5 }
 0x894   : > { %v2290_v50 = vmul.f32 %v3418_v7, %v2278_v52  ;;  %v2308_v43 = vadd.f32 %v2900_v2, %v2298_v11 }
 0x896   : > { %v2311_v57 = vpack.c.bf16 %v2308_v43, %v2307_v39  ;;  %v2300_v9 = vmul.f32 %v2899_v63, %v2290_v50 }
 0x898   : > { %3103 = vmatprep.mubr.msk.bf16.mxu0 %vm934_vm1, %v2311_v57  ;;  %v2310_v12 = vadd.f32 %v2900_v2, %v2300_v9 }
 0x89a   : > { %v2312_v8 = vpack.c.bf16 %v2310_v12, %v2309_v10 }
 0x89c   : > { %3104 = vmatmul.mubr.msk.bf16.vlgmr.msra.gmra.mrb[24].mxu0 %vm934_vm1, %v2312_v8 }
 0x96f   : > { %v3105_v14 = vpop.f32.mrb[24].mxu0 }
 0x970   : > { %v2385_v15 = vadd.f32 %v3105_v14, %v2901_v44  ;;  %v2376_v3 = vpop.f32.mrb[25].mxu0 }
 0x971   : > { %v2377_v19 = vadd.f32 %v2901_v44, %v2376_v3  ;;  %v3106_v17 = vpop.f32.mrb[26].mxu0 }
 0x972   : > { %v2388_v21 = vadd.f32 %v3106_v17, %v2901_v44  ;;  %v2379_v24 = vpop.f32.mrb[27].mxu0  ;;  %v2393_v27 = vmax.f32 %v2385_v15, 0.0 }
 0x973   : > { %v2380_v25 = vadd.f32 %v2901_v44, %v2379_v24  ;;  %v2391_v31 = vmax.f32 %v2377_v19, 0.0 }
 0x974   : > { %v2394_v29 = vmax.f32 %v2388_v21, 0.0  ;;  %v2915_v21 = vld [vmem:[%s757_s23] ss:$0 sm:$0xff] }
 0x975   : > { %v2392_v32 = vmax.f32 %v2380_v25, 0.0 }
 0x976   : > { %v2396_v33 = vpack.c.bf16 %v2394_v29, %v2393_v27  ;;  %v2916_v29 = vld [vmem:[%s4161_s19] ss:$0 sm:$0xff] }
 0x977   : > { %v2395_v34 = vpack.c.bf16 %v2392_v32, %v2391_v31 }
 0x979   : > { %3123 = vmatprep.mubr.bf16.mxu1 %v2395_v34 }
 0x97a   : > { %3124 = vmatmul.mubr.bf16.vlgmr.msra.gmra.mrb[16].mxu1 %v2396_v33 }
 0xa4d   : > { %v3125_v37 = vpop.f32.mrb[16].mxu1 }
 0xa4e   : > { %v2511_v38 = vadd.f32 %v3125_v37, %v2906_v35  ;;  %v2502_v41 = vpop.f32.mrb[17].mxu1 }
 0xa4f   : > { %v2503_v6 = vadd.f32 %v2906_v35, %v2502_v41  ;;  %v3126_v60 = vpop.f32.mrb[18].mxu1 }
 0xa50   : > { %v4039_v61 = vadd.f32 %v2511_v38, %v2309_v10  ;;  %v2514_v45 = vadd.f32 %v3126_v60, %v2906_v35  ;;  %v2505_v46 = vpop.f32.mrb[19].mxu1 }
 0xa51   : > { %v2506_v47 = vadd.f32 %v2906_v35, %v2505_v46  ;;  %v2517_v40 = vadd.f32 %v2503_v6, %v2307_v39 }
 0xa52   : > { %v4041_v20 = vadd.f32 %v2514_v45, %v2310_v12  ;;  %v2529_v48 = vsel %vm934_vm1, %v4039_v61, 0.0  ;;  %v2541_v54 = vmul.f32 %v4039_v61, %v4039_v61 }
 0xa53   : > { %2530 = vadd.xlane.f32.xlu1 %v2529_v48  ;;  %v2518_v23 = vadd.f32 %v2506_v47, %v2308_v43  ;;  %v2523_v49 = vsel %vm934_vm1, %v2517_v40, 0.0  ;;  %v2539_v51 = vmul.f32 %v2517_v40, %v2517_v40 }
 0xa54   : > { %v2532_v42 = vsel %vm934_vm1, %v4041_v20, 0.0  ;;  %v2542_v26 = vmul.f32 %v4041_v20, %v4041_v20  ;;  %v2549_v58 = vsel %vm934_vm1, %v2541_v54, 0.0 }
 0xa55   : > { %2533 = vadd.xlane.f32.xlu0 %v2532_v42  ;;  %v2526_v1 = vsel %vm934_vm1, %v2518_v23, 0.0  ;;  %v2540_v55 = vmul.f32 %v2518_v23, %v2518_v23  ;;  %v2543_v4 = vsel %vm934_vm1, %v2539_v51, 0.0 }
 0xa56   : > { %v2552_v30 = vsel %vm934_vm1, %v2542_v26, 0.0 }
 0xa57   : > { %2524 = vadd.xlane.f32.xlu1 %v2523_v49  ;;  %v2546_v16 = vsel %vm934_vm1, %v2540_v55, 0.0  ;;  %v2918_v49 = vld [vmem:[%s4163_s29] ss:$0 sm:$0xff] (!%p2917_p5) }
 0xa59   : > { %2527 = vadd.xlane.f32.xlu0 %v2526_v1 }
 0xa5b   : > { %2544 = vadd.xlane.f32.xlu1 %v2543_v4 }
 0xa5d   : > { %2547 = vadd.xlane.f32.xlu0 %v2546_v16 }
 0xa5f   : > { %2550 = vadd.xlane.f32.xlu1 %v2549_v58 }
 0xa61   : > { %2553 = vadd.xlane.f32.xlu0 %v2552_v30 }
 0xae0   : > { %v2531_v56 = vpop.xlane.xlu1 %2530 }
 0xae1   : > { %v2537_v28 = vmul.f32 0.03125, %v2531_v56 }
 0xae2   : > { %v2534_v63 = vpop.xlane.xlu0 %2533 }
 0xae3   : > { %v2538_v52 = vmul.f32 0.03125, %v2534_v63  ;;  %v2561_v5 = vmul.f32 %v2537_v28, %v2537_v28  ;;  %v2569_v31 = vsub.f32 %v4039_v61, %v2537_v28 }
 0xae4   : > { %v2525_v18 = vpop.xlane.xlu1 %2524 }
 0xae5   : > { %v2535_v36 = vmul.f32 0.03125, %v2525_v18  ;;  %v2562_v12 = vmul.f32 %v2538_v52, %v2538_v52  ;;  %v2570_v35 = vsub.f32 %v4041_v20, %v2538_v52  ;;  %v3431_v20 = vld [vmem:[%s4162_s22] sm:$0xff] (!%p2917_p5)  }
 0xae6   : > { %v2528_v0 = vpop.xlane.xlu0 %2527  ;;  %3127 = vmatprep.subr.bf16.mxu0 (!%p2917_p5), %v3431_v20 }
 0xae7   : > { %v2536_v59 = vmul.f32 0.03125, %v2528_v0  ;;  %v2559_v62 = vmul.f32 %v2535_v36, %v2535_v36  ;;  %v2567_v19 = vsub.f32 %v2517_v40, %v2535_v36  ;;  %3128 = vmatpush3.bf16.msra.mxu0 (!%p2917_p5), %v3431_v20 }
 0xae8   : > { %v2545_v53 = vpop.xlane.xlu1 %2544 }
 0xae9   : > { %v2555_v2 = vmul.f32 0.03125, %v2545_v53  ;;  %v2560_v7 = vmul.f32 %v2536_v59, %v2536_v59  ;;  %v2568_v24 = vsub.f32 %v2518_v23, %v2536_v59  ;;  %v3432_v23 = vld [vmem:[%s4162_s22 + $0x8] sm:$0xff] (!%p2917_p5)  }
 0xaea   : > { %v2548_v11 = vpop.xlane.xlu0 %2547  ;;  %3129 = vmatprep.subr.bf16.mxu0 (!%p2917_p5), %v3432_v23 }
 0xaeb   : > { %v2563_v50 = vsub.f32 %v2555_v2, %v2559_v62  ;;  %v2556_v39 = vmul.f32 0.03125, %v2548_v11  ;;  %3130 = vmatpush3.bf16.msra.mxu0 (!%p2917_p5), %v3432_v23 }
 0xaec   : > { %v2551_v43 = vpop.xlane.xlu1 %2550 }
 0xaed   : > { %v2571_v57 = vadd.f32 1e-05, %v2563_v50  ;;  %v2564_v9 = vsub.f32 %v2556_v39, %v2560_v7  ;;  %v2557_v10 = vmul.f32 0.03125, %v2551_v43 }
 0xaee   : > { %v2554_v8 = vpop.xlane.xlu0 %2553 }
 0xaef   : > { %3419 = vrsqrt.f32 %v2571_v57  ;;  %v2572_v13 = vadd.f32 1e-05, %v2564_v9  ;;  %v2565_v22 = vsub.f32 %v2557_v10, %v2561_v5  ;;  %v2558_v44 = vmul.f32 0.03125, %v2554_v8 }
 0xaf1   : > { %3421 = vrsqrt.f32 %v2572_v13  ;;  %v2573_v14 = vadd.f32 1e-05, %v2565_v22  ;;  %v2566_v15 = vsub.f32 %v2558_v44, %v2562_v12 }
 0xaf3   : > { %3423 = vrsqrt.f32 %v2573_v14  ;;  %v2574_v3 = vadd.f32 1e-05, %v2566_v15 }
 0xaf5   : > { %3425 = vrsqrt.f32 %v2574_v3 }
 0xaf9   : > { %v3420_v17 = vpop.eup %3419 }
 0xafa   : > { %v2579_v25 = vmul.f32 %v3420_v17, %v2567_v19 }
 0xafb   : > { %v3422_v27 = vpop.eup %3421 }
 0xafc   : > { %v2589_v32 = vmul.f32 %v2915_v21, %v2579_v25  ;;  %v2580_v33 = vmul.f32 %v3422_v27, %v2568_v24 }
 0xafd   : > { %v3424_v34 = vpop.eup %3423 }
 0xafe   : > { %v2599_v37 = vadd.f32 %v2916_v29, %v2589_v32  ;;  %v2590_v38 = vmul.f32 %v2915_v21, %v2580_v33  ;;  %v2581_v41 = vmul.f32 %v3424_v34, %v2569_v31 }
 0xaff   : > { %v3426_v6 = vpop.eup %3425 }
 0xb00   : > { %2603 = vst.msk [vmem:[#allocation2] sm:$0xff] %vm934_vm1, %v2599_v37  ;;  %v2600_v60 = vadd.f32 %v2916_v29, %v2590_v38  ;;  %v2591_v45 = vmul.f32 %v2915_v21, %v2581_v41  ;;  %v2582_v46 = vmul.f32 %v3426_v6, %v2570_v35  ;;  %2610 = sbr.rel (%p2917_p5) target bundleno = 3042 (0xbe2), region = 104 }
 0xb02   : > { %2604 = vst.msk [vmem:[#allocation2 + $0x8] sm:$0xff] %vm934_vm1, %v2600_v60  ;;  %v2601_v47 = vadd.f32 %v2916_v29, %v2591_v45  ;;  %v2592_v40 = vmul.f32 %v2915_v21, %v2582_v46  ;;  %v2611_v48 = vpack.c.bf16 (!%p2917_p5), %v2600_v60, %v2599_v37 }
 0xb04   : > { %2605 = vst.msk [vmem:[#allocation2 + $0x10] sm:$0xff] %vm934_vm1, %v2601_v47  ;;  %v2602_v61 = vadd.f32 %v2916_v29, %v2592_v40  ;;  %3131 = vmatprep.mubr.msk.bf16.mxu0 (!%p2917_p5), %vm934_vm1, %v2611_v48 }
 0xb06   : > { %2606 = vst.msk [vmem:[#allocation2 + $0x18] sm:$0xff] %vm934_vm1, %v2602_v61  ;;  %v2612_v42 = vpack.c.bf16 (!%p2917_p5), %v2602_v61, %v2601_v47 }
 0xb08   : > { %3132 = vmatmul.mubr.msk.bf16.vlgmr.msra.gmra.mrb[0].mxu0 %vm934_vm1, %v2612_v42 }
 0xbdb   : > { %v3133_v51 = vpop.f32.mrb[0].mxu0 }
 0xbdc   : > { %v2685_v1 = vadd.f32 %v3133_v51, %v2918_v49  ;;  %v2676_v55 = vpop.f32.mrb[1].mxu0 }
 0xbdd   : > { %v2677_v4 = vadd.f32 %v2918_v49, %v2676_v55  ;;  %v3134_v54 = vpop.f32.mrb[2].mxu0 }
 0xbde   : > { %2693 = vst [vmem:[#allocation3 + $0x10] sm:$0xff] %v2685_v1  ;;  %v2688_v16 = vadd.f32 %v3134_v54, %v2918_v49  ;;  %v2679_v26 = vpop.f32.mrb[3].mxu0 }
 0xbdf   : > { %2691 = vst [vmem:[#allocation3] sm:$0xff] %v2677_v4  ;;  %v2680_v58 = vadd.f32 %v2918_v49, %v2679_v26 }
 0xbe0   : > { %2694 = vst [vmem:[#allocation3 + $0x18] sm:$0xff] %v2688_v16 }
 0xbe1   : > { %2692 = vst [vmem:[#allocation3 + $0x8] sm:$0xff] %v2680_v58 }
 0xbe2 PF: > { %p3147_p6 = scmp.eq.s32.totalorder %s3582_s30, 2  ;;  %s3474_s0 = smov [#allocation3]  }
 0xbe3   : > { %s2701_s2 = sshll.u32 %s3474_s0, 4  ;;  %s2702_s2 = int_to_ptr.vmem [resolvable:$true] %s2701_s2 }
 0xbe4   : > { %s3433_s7 = scalar_lea.vmem %s2702_s2, 512  ;;  %p3440_p10 = scmp.lt.s32.totalorder %s2702_s2, %s2702_s2 }
 0xbe5   : > { %p3434_p7 = scmp.ne.s32.totalorder %s2702_s2, %s3433_s7  ;;  %p3441_p11 = scmp.lt.s32.totalorder %s3433_s7, %s3433_s7 }
 0xbe7   : > { %p3435_p8 = pnand %p3434_p7, %p3147_p6  ;;  %p3442_p12 = por %p3441_p11, %p3440_p10 }
 0xbe9   : > { %p3436_p9 = pneg %p3435_p8 }
 0xbeb   : > { %p3443_p13 = pnand %p3442_p12, %p3436_p9 }
 0xbed   : > { %3446 = shalt.err (!%p3443_p13)
}
 0xbee   : > { %s4164_s5 = sld [smem:[#allocation16_spill]] }
 0xbf4   : > { %s3447_s19 = scalar_lea.hbm %s4164_s5, 512 }
 0xbf5   : > { %p3448_p0 = scmp.ne.s32.totalorder %s4164_s5, %s3447_s19  ;;  %p3453_p3 = scmp.lt.u32.totalorder %s3447_s19, %s4164_s5 }
 0xbf7   : > { %p3449_p1 = pnand %p3448_p0, %p3147_p6 }
 0xbf9   : > { %p3450_p2 = pneg %p3449_p1 }
 0xbfb   : > { %p3455_p4 = pnand %p3453_p3, %p3450_p2 }
 0xbfd   : > { %3458 = shalt.err (!%p3455_p4)
}
 0xbfe   : > { %s3475_s25 = smov 128  }
 0xbff   : > { %3144 = dma.vmem_to_hbm [thread:$0]  (%p3147_p6), %s2702_s2, 512, %s4164_s5, [#allocation4], %s3475_s25, %s3475_s25, %s3471_s26  }
 0xc00   : > { %3464 = dma.done.wait (%p3147_p6), [#allocation4], 512  }
 0xc01   : > { %3466 = vsyncadd (%p3147_p6), [#allocation4], 4294966784 }
 0xc02 PF: > { %s4165_s0 = sld [smem:[#allocation6_spill]] }
 0xc08   : > { %s30_s0 = sadd.s32 1, %s4165_s0  }
 0xc09   : > { %p27_p5 = scmp.ge.s32.totalorder %s30_s0, 5  }
 0xc0b   :  { %29 = sbr.rel (!%p27_p5) target bundleno = 11 (0xb), region = 164 }
 0xc12   :  { %2717 = vsyncpa [#allocation4], 1 }
 0xc13   :  { %2719 = vsyncpa [#allocation4 + $0x1], 1 }

</bundles_post_ra>
